<compile_context>
chip_gen: v5e
topology: v5e:2x2
jax: 0.10.0
libtpu: 0.0.40
codegen_flags: <defaults>
</compile_context>

<pallas_src>
import jax
import jax.numpy as jnp
from jax import lax
from jax.experimental import pallas as pl
from jax.experimental.pallas import tpu as pltpu


def _round_up(n, m):
    return ((n + m - 1) // m) * m


def _pad_to(arr, shape):
    pads = [(0, s - d) for d, s in zip(arr.shape, shape)]
    if all(p == (0, 0) for p in pads):
        return arr
    return jnp.pad(arr, pads)


def _default_vmem_limit():
    try:
        cap = int(pltpu.get_tpu_info().vmem_capacity_bytes)
        return min(100 * 1024 * 1024, (cap * 3) // 4)   # ~96MiB v5e/v6e, 48MiB v7x
    except Exception:
        return 48 * 1024 * 1024                          # safe on every generation


def fused_forward_kernel(ids_ref, table_ref, wz_ref, wenc_ref, benc_ref,
                         wheads_ref, bias_ref, final_ref, zmask_ref):
    bb, T = ids_ref.shape
    Vp = table_ref.shape[0]
    Ep, A = wz_ref.shape

    ids = ids_ref[...]                                       # [bb, T] int32
    mask_f = (ids != 1).astype(jnp.float32)                  # padding_idx = 1

    # ---- in-kernel embedding gather: one-hot on the MXU against the resident
    #      [Vp, 2*Ep] bf16 table (exact: one-hot weights are 0/1).
    onehot = (ids[:, :, None] ==
              lax.broadcasted_iota(jnp.int32, (bb, T, Vp), 2))
    onehot = onehot.astype(jnp.bfloat16).reshape(bb * T, Vp)
    emb_all = jnp.dot(onehot, table_ref[...],
                      preferred_element_type=jnp.float32).astype(jnp.bfloat16)
    emb_lat = emb_all[:, :Ep]                                # [bb*T, Ep] bf16
    emb_trn = emb_all[:, Ep:]                                # [bb*T, Ep] bf16

    # ---- all-aspect latent gates in ONE matmul (bf16 x bf16 -> f32) ----
    zlogit = jnp.dot(emb_lat, wz_ref[...],
                     preferred_element_type=jnp.float32)     # [bb*T, A]
    zgate = jax.nn.sigmoid(zlogit.reshape(bb, T, A)) * mask_f[:, :, None]
    z_t = jnp.transpose(zgate, (0, 2, 1))                    # [bb, A, T]

    # rationale mask, emitted lane-dense on T as (bb*A, T) int8
    zmask_ref[...] = (z_t.reshape(bb * A, T) > 0.5).astype(jnp.int8)

    # ---- shared "transformer" encoder (computed once), kept in bf16 ----
    h = jnp.tanh(jnp.dot(emb_trn, wenc_ref[...],
                         preferred_element_type=jnp.float32)
                 + benc_ref[...]).astype(jnp.bfloat16)       # [bb*T, Hp]

    # ---- heads hoisted ahead of pooling (exact by linearity) ----
    hv = jnp.dot(h, wheads_ref[...],
                 preferred_element_type=jnp.float32)         # [bb*T, 3]
    hv3 = hv.reshape(bb, T, 3)                               # [., wr | wpt | wpy]

    # rationale-weighted pooling of the projected heads (tiny batched matmul)
    pooled = jnp.matmul(z_t, hv3,
                        preferred_element_type=jnp.float32)  # [bb, A, 3]
    denom = jnp.sum(z_t, axis=2) + 1e-6                      # [bb, A]
    pooled = pooled * pl.reciprocal(denom, approx=True)[:, :, None]

    # mask-mean pooled y, already projected by wpy (head column 2)
    n_tok = jnp.sum(mask_f, axis=1, keepdims=True) + 1e-6    # [bb, 1]
    y_py = (jnp.sum(mask_f * hv3[:, :, 2], axis=1, keepdims=True)
            * pl.reciprocal(n_tok, approx=True))             # [bb, 1]

    b_r = bias_ref[0, 0]
    b_p = bias_ref[0, 1]
    rating = jax.nn.sigmoid(pooled[:, :, 0] + b_r)           # [bb, A]
    polarity = jax.nn.sigmoid(pooled[:, :, 1] + y_py + b_p)  # [bb, A]

    # ---- polarity-normalised aggregation ----
    p_sum = jnp.sum(polarity, axis=1, keepdims=True) + 1e-12
    p_norm = polarity * pl.reciprocal(p_sum, approx=True)
    final_ref[...] = jnp.sum(rating * p_norm, axis=1, keepdims=True)  # [bb, 1]


def multi_aspect_forward(x, params, *, block_b=64):
    """Returns (final_rating [B,1] f32, z_matrix [B,A,T] int8 with 0/1)."""
    B, T = x.shape
    A, E, _ = params["wz"].shape
    H = params["wenc"].shape[1]
    V = params["embed_latent"].shape[0]

    Ep, Hp, Vp = _round_up(E, 128), _round_up(H, 128), _round_up(V, 128)
    Tp = _round_up(T, 8)

    # one fused [Vp, 2*Ep] bf16 embedding table: [latent | transformer]
    table = jnp.concatenate(
        [_pad_to(params["embed_latent"], (Vp, Ep)),
         _pad_to(params["embed_trans"], (Vp, Ep))], axis=1).astype(jnp.bfloat16)

    wz = _pad_to(jnp.transpose(params["wz"][:, :, 0]), (Ep, A)).astype(jnp.bfloat16)
    wenc = _pad_to(params["wenc"], (Ep, Hp)).astype(jnp.bfloat16)
    benc = _pad_to(params["benc"], (1, Hp)).astype(jnp.float32)
    wheads = _pad_to(jnp.concatenate(
        [params["wr"], params["wpt"], params["wpy"]], axis=1),
        (Hp, 3)).astype(jnp.bfloat16)
    bias = jnp.concatenate([params["br"], params["bp"]], axis=1).astype(jnp.float32)

    # batch tile: multiple of 8 sublanes; pad B with all-padding rows (id == 1)
    bb = max(8, (min(block_b, _round_up(B, 8)) // 8) * 8)
    B_pad = _round_up(B, bb)
    ids = jnp.pad(x.astype(jnp.int32), ((0, B_pad - B), (0, Tp - T)),
                  constant_values=1)

    final_p, zmask_p = pl.pallas_call(
        fused_forward_kernel,
        out_shape=(
            jax.ShapeDtypeStruct((B_pad, 1), jnp.float32),
            jax.ShapeDtypeStruct((B_pad * A, Tp), jnp.int8),
        ),
        grid_spec=pltpu.PrefetchScalarGridSpec(
            num_scalar_prefetch=0,
            grid=(B_pad // bb,),
            in_specs=[
                pl.BlockSpec((bb, Tp), lambda i: (i, 0)),           # token ids
                pl.BlockSpec((Vp, 2 * Ep), lambda i: (0, 0)),       # fused embed table
                pl.BlockSpec((Ep, A), lambda i: (0, 0)),            # all-aspect gate W
                pl.BlockSpec((Ep, Hp), lambda i: (0, 0)),           # shared encoder W
                pl.BlockSpec((1, Hp), lambda i: (0, 0)),            # shared encoder b
                pl.BlockSpec((Hp, 3), lambda i: (0, 0)),            # [wr | wpt | wpy]
                pl.BlockSpec(memory_space=pltpu.MemorySpace.SMEM),  # [br, bp] scalars
            ],
            out_specs=[
                pl.BlockSpec((bb, 1), lambda i: (i, 0)),
                pl.BlockSpec((bb * A, Tp), lambda i: (i, 0)),
            ],
        ),
        compiler_params=pltpu.CompilerParams(
            dimension_semantics=("parallel",),
            vmem_limit_bytes=_default_vmem_limit()),
    )(ids, table, wz, wenc, benc, wheads, bias)

    final_rating = final_p[:B]
    z_matrix = zmask_p.reshape(B_pad, A, Tp)[:B, :, :T]
    return final_rating, z_matrix


if __name__ == "__main__":
    B, T, E, H, A, V = 16, 8, 32, 32, 3, 64

    key = jax.random.PRNGKey(0)
    ks = jax.random.split(key, 10)
    params = {
        "embed_latent": 0.1 * jax.random.normal(ks[0], (V, E), jnp.float32),
        "embed_trans": 0.1 * jax.random.normal(ks[1], (V, E), jnp.float32),
        "wz":   0.5 * jax.random.normal(ks[2], (A, E, 1), jnp.float32),
        "wenc": 0.2 * jax.random.normal(ks[3], (E, H), jnp.float32),
        "benc": 0.1 * jax.random.normal(ks[4], (1, H), jnp.float32),
        "wr":   0.2 * jax.random.normal(ks[5], (H, 1), jnp.float32),
        "br":   jnp.zeros((1, 1), jnp.float32),
        "wpy":  0.2 * jax.random.normal(ks[6], (H, 1), jnp.float32),
        "wpt":  0.2 * jax.random.normal(ks[7], (H, 1), jnp.float32),
        "bp":   jnp.zeros((1, 1), jnp.float32),
    }
    # nn.Embedding(padding_idx=1): zero out the padding row.
    params["embed_latent"] = params["embed_latent"].at[1].set(0.0)
    params["embed_trans"] = params["embed_trans"].at[1].set(0.0)

    x = jax.random.randint(ks[8], (B, T), 0, V, dtype=jnp.int32)
    x = x.at[0, T - 2:].set(1)   # some padding tokens (id == 1)
    x = x.at[3, T - 4:].set(1)

    # block_b=8 -> grid of 2 tiles to exercise the pipelined / parallel path
    final_rating, z_matrix = multi_aspect_forward(x, params, block_b=8)
    jax.block_until_ready((final_rating, z_matrix))

    assert final_rating.shape == (B, 1) and final_rating.dtype == jnp.float32
    assert z_matrix.shape == (B, A, T) and z_matrix.dtype == jnp.int8
    assert bool(jnp.all(jnp.isfinite(final_rating)))
    assert bool(jnp.all((z_matrix == 0) | (z_matrix == 1)))
    print("KERNEL_OK")
</pallas_src>

<mosaic_0001>
module attributes {stable_mosaic.version = 11 : i64} {
  func.func @fused_forward_kernel(%arg0: i32, %arg1: memref<8x8xi32, #tpu.memory_space<vmem>>, %arg2: memref<128x256xbf16, #tpu.memory_space<vmem>>, %arg3: memref<128x3xbf16, #tpu.memory_space<vmem>>, %arg4: memref<128x128xbf16, #tpu.memory_space<vmem>>, %arg5: memref<1x128xf32, #tpu.memory_space<vmem>>, %arg6: memref<128x3xbf16, #tpu.memory_space<vmem>>, %arg7: memref<1x2xf32, #tpu.memory_space<smem>>, %arg8: memref<8x1xf32, #tpu.memory_space<vmem>>, %arg9: memref<24x8xi8, #tpu.memory_space<vmem>>) attributes {dimension_semantics = [#tpu.dimension_semantics<parallel>], iteration_bounds = array<i64: 2>, scalar_prefetch = 0 : i64, scratch_operands = 0 : i64, tpu.core_type = #tpu.core_type<tc>, window_params = [{transform_indices = @transform_0, window_bounds = array<i64: 8, 8>}, {pipeline_mode = #tpu.pipeline_mode<synchronous>, transform_indices = @transform_1, window_bounds = array<i64: 128, 256>}, {pipeline_mode = #tpu.pipeline_mode<synchronous>, transform_indices = @transform_2, window_bounds = array<i64: 128, 3>}, {pipeline_mode = #tpu.pipeline_mode<synchronous>, transform_indices = @transform_3, window_bounds = array<i64: 128, 128>}, {pipeline_mode = #tpu.pipeline_mode<synchronous>, transform_indices = @transform_4, window_bounds = array<i64: 1, 128>}, {pipeline_mode = #tpu.pipeline_mode<synchronous>, transform_indices = @transform_5, window_bounds = array<i64: 128, 3>}, {transform_indices = @transform_6, window_bounds = array<i64: 1, 2>}, {transform_indices = @transform_7, window_bounds = array<i64: 8, 1>}, {transform_indices = @transform_8, window_bounds = array<i64: 24, 8>}]} {
    %c0 = arith.constant 0 : index
    %c0_0 = arith.constant 0 : index
    %0 = vector.load %arg1[%c0, %c0_0] : memref<8x8xi32, #tpu.memory_space<vmem>>, vector<8x8xi32>
    %c1_i32 = arith.constant 1 : i32
    %1 = vector.broadcast %c1_i32 : i32 to vector<8x8xi32>
    %2 = arith.cmpi ne, %0, %1 : vector<8x8xi32>
    %3 = arith.extui %2 : vector<8x8xi1> to vector<8x8xi32>
    %4 = arith.sitofp %3 : vector<8x8xi32> to vector<8x8xf32>
    %5 = vector.shape_cast %0 : vector<8x8xi32> to vector<8x8x1xi32>
    %6 = tpu.iota {dimensions = array<i32: 2>} : vector<8x8x128xi32>
    %7 = vector.broadcast %5 : vector<8x8x1xi32> to vector<8x8x128xi32>
    %8 = arith.cmpi eq, %7, %6 : vector<8x8x128xi32>
    %9 = arith.extui %8 : vector<8x8x128xi1> to vector<8x8x128xi32>
    %10 = arith.sitofp %9 : vector<8x8x128xi32> to vector<8x8x128xf32>
    %11 = arith.truncf %10 : vector<8x8x128xf32> to vector<8x8x128xbf16>
    %12 = vector.shape_cast %11 : vector<8x8x128xbf16> to vector<64x128xbf16>
    %c0_1 = arith.constant 0 : index
    %c0_2 = arith.constant 0 : index
    %13 = vector.load %arg2[%c0_1, %c0_2] : memref<128x256xbf16, #tpu.memory_space<vmem>>, vector<128x256xbf16>
    %cst = arith.constant dense<0.000000e+00> : vector<64x256xf32>
    %14 = tpu.matmul %12, %13, %cst {dimension_numbers = #tpu.dot_dimension_numbers<[1], [0], [0], [1], [0, 0, 1, 1], [], []>} : vector<64x128xbf16>, vector<128x256xbf16>, vector<64x256xf32> -> vector<64x256xf32>
    %15 = arith.truncf %14 : vector<64x256xf32> to vector<64x256xbf16>
    %16 = vector.extract_strided_slice %15 {offsets = [0, 0], sizes = [64, 128], strides = [1, 1]} : vector<64x256xbf16> to vector<64x128xbf16>
    %17 = vector.extract_strided_slice %15 {offsets = [0, 128], sizes = [64, 128], strides = [1, 1]} : vector<64x256xbf16> to vector<64x128xbf16>
    %c0_3 = arith.constant 0 : index
    %c0_4 = arith.constant 0 : index
    %18 = vector.load %arg3[%c0_3, %c0_4] : memref<128x3xbf16, #tpu.memory_space<vmem>>, vector<128x3xbf16>
    %cst_5 = arith.constant dense<0.000000e+00> : vector<64x3xf32>
    %19 = tpu.matmul %16, %18, %cst_5 {dimension_numbers = #tpu.dot_dimension_numbers<[1], [0], [0], [1], [0, 0, 1, 1], [], []>} : vector<64x128xbf16>, vector<128x3xbf16>, vector<64x3xf32> -> vector<64x3xf32>
    %20 = vector.shape_cast %19 : vector<64x3xf32> to vector<8x8x3xf32>
    %21 = arith.negf %20 : vector<8x8x3xf32>
    %22 = math.exp %21 : vector<8x8x3xf32>
    %cst_6 = arith.constant 1.000000e+00 : f32
    %23 = vector.broadcast %cst_6 : f32 to vector<8x8x3xf32>
    %24 = arith.addf %23, %22 : vector<8x8x3xf32>
    %25 = arith.divf %23, %24 : vector<8x8x3xf32>
    %26 = vector.shape_cast %4 : vector<8x8xf32> to vector<8x8x1xf32>
    %27 = vector.broadcast %26 : vector<8x8x1xf32> to vector<8x8x3xf32>
    %28 = arith.mulf %25, %27 : vector<8x8x3xf32>
    %29 = tpu.transpose %28, [0, 2, 1] : vector<8x8x3xf32> -> vector<8x3x8xf32>
    %30 = vector.shape_cast %29 : vector<8x3x8xf32> to vector<24x8xf32>
    %cst_7 = arith.constant 5.000000e-01 : f32
    %31 = vector.broadcast %cst_7 : f32 to vector<24x8xf32>
    %32 = arith.cmpf ogt, %30, %31 : vector<24x8xf32>
    %33 = arith.extui %32 : vector<24x8xi1> to vector<24x8xi8>
    %c0_8 = arith.constant 0 : index
    %c0_9 = arith.constant 0 : index
    %34 = vector.load %arg9[%c0_8, %c0_9] : memref<24x8xi8, #tpu.memory_space<vmem>>, vector<24x8xi8>
    tpu.vector_store %arg9[%c0_8, %c0_9], %33 {strides = array<i32>} : memref<24x8xi8, #tpu.memory_space<vmem>>, vector<24x8xi8>,
    %c0_10 = arith.constant 0 : index
    %c0_11 = arith.constant 0 : index
    %35 = vector.load %arg4[%c0_10, %c0_11] : memref<128x128xbf16, #tpu.memory_space<vmem>>, vector<128x128xbf16>
    %cst_12 = arith.constant dense<0.000000e+00> : vector<64x128xf32>
    %36 = tpu.matmul %17, %35, %cst_12 {dimension_numbers = #tpu.dot_dimension_numbers<[1], [0], [0], [1], [0, 0, 1, 1], [], []>} : vector<64x128xbf16>, vector<128x128xbf16>, vector<64x128xf32> -> vector<64x128xf32>
    %c0_13 = arith.constant 0 : index
    %c0_14 = arith.constant 0 : index
    %37 = vector.load %arg5[%c0_13, %c0_14] : memref<1x128xf32, #tpu.memory_space<vmem>>, vector<1x128xf32>
    %38 = vector.broadcast %37 : vector<1x128xf32> to vector<64x128xf32>
    %39 = arith.addf %36, %38 : vector<64x128xf32>
    %40 = math.tanh %39 : vector<64x128xf32>
    %41 = arith.truncf %40 : vector<64x128xf32> to vector<64x128xbf16>
    %c0_15 = arith.constant 0 : index
    %c0_16 = arith.constant 0 : index
    %42 = vector.load %arg6[%c0_15, %c0_16] : memref<128x3xbf16, #tpu.memory_space<vmem>>, vector<128x3xbf16>
    %cst_17 = arith.constant dense<0.000000e+00> : vector<64x3xf32>
    %43 = tpu.matmul %41, %42, %cst_17 {dimension_numbers = #tpu.dot_dimension_numbers<[1], [0], [0], [1], [0, 0, 1, 1], [], []>} : vector<64x128xbf16>, vector<128x3xbf16>, vector<64x3xf32> -> vector<64x3xf32>
    %44 = vector.shape_cast %43 : vector<64x3xf32> to vector<8x8x3xf32>
    %cst_18 = arith.constant dense<0.000000e+00> : vector<8x3x3xf32>
    %45 = tpu.matmul %29, %44, %cst_18 {dimension_numbers = #tpu.dot_dimension_numbers<[2], [1], [1], [2], [0, 0, 0, 1, 1, 2], [0], [0]>} : vector<8x3x8xf32>, vector<8x8x3xf32>, vector<8x3x3xf32> -> vector<8x3x3xf32>
    %cst_19 = arith.constant dense<0.000000e+00> : vector<8x3xf32>
    %46 = vector.multi_reduction <add>, %29, %cst_19 [2] : vector<8x3x8xf32> to vector<8x3xf32>
    %cst_20 = arith.constant 9.99999997E-7 : f32
    %47 = vector.broadcast %cst_20 : f32 to vector<8x3xf32>
    %48 = arith.addf %46, %47 : vector<8x3xf32>
    %49 = tpu.reciprocal %48 {approx = true} : vector<8x3xf32> -> vector<8x3xf32>
    %50 = vector.shape_cast %49 : vector<8x3xf32> to vector<8x3x1xf32>
    %51 = vector.broadcast %50 : vector<8x3x1xf32> to vector<8x3x3xf32>
    %52 = arith.mulf %45, %51 : vector<8x3x3xf32>
    %cst_21 = arith.constant dense<0.000000e+00> : vector<8xf32>
    %53 = vector.multi_reduction <add>, %4, %cst_21 [1] : vector<8x8xf32> to vector<8xf32>
    %54 = vector.shape_cast %53 : vector<8xf32> to vector<8x1xf32>
    %cst_22 = arith.constant 9.99999997E-7 : f32
    %55 = vector.broadcast %cst_22 : f32 to vector<8x1xf32>
    %56 = arith.addf %54, %55 : vector<8x1xf32>
    %57 = vector.extract_strided_slice %44 {offsets = [0, 0, 2], sizes = [8, 8, 1], strides = [1, 1, 1]} : vector<8x8x3xf32> to vector<8x8x1xf32>
    %58 = vector.shape_cast %57 : vector<8x8x1xf32> to vector<8x8xf32>
    %59 = arith.mulf %4, %58 : vector<8x8xf32>
    %cst_23 = arith.constant dense<0.000000e+00> : vector<8xf32>
    %60 = vector.multi_reduction <add>, %59, %cst_23 [1] : vector<8x8xf32> to vector<8xf32>
    %61 = vector.shape_cast %60 : vector<8xf32> to vector<8x1xf32>
    %62 = tpu.reciprocal %56 {approx = true} : vector<8x1xf32> -> vector<8x1xf32>
    %63 = arith.mulf %61, %62 : vector<8x1xf32>
    %c0_24 = arith.constant 0 : index
    %c0_25 = arith.constant 0 : index
    %64 = memref.load %arg7[%c0_24, %c0_25] : memref<1x2xf32, #tpu.memory_space<smem>>
    %c0_26 = arith.constant 0 : index
    %c1 = arith.constant 1 : index
    %65 = memref.load %arg7[%c0_26, %c1] : memref<1x2xf32, #tpu.memory_space<smem>>
    %66 = vector.extract_strided_slice %52 {offsets = [0, 0, 0], sizes = [8, 3, 1], strides = [1, 1, 1]} : vector<8x3x3xf32> to vector<8x3x1xf32>
    %67 = vector.shape_cast %66 : vector<8x3x1xf32> to vector<8x3xf32>
    %68 = vector.broadcast %64 : f32 to vector<8x3xf32>
    %69 = arith.addf %67, %68 : vector<8x3xf32>
    %70 = arith.negf %69 : vector<8x3xf32>
    %71 = math.exp %70 : vector<8x3xf32>
    %cst_27 = arith.constant 1.000000e+00 : f32
    %72 = vector.broadcast %cst_27 : f32 to vector<8x3xf32>
    %73 = arith.addf %72, %71 : vector<8x3xf32>
    %74 = arith.divf %72, %73 : vector<8x3xf32>
    %75 = vector.extract_strided_slice %52 {offsets = [0, 0, 1], sizes = [8, 3, 1], strides = [1, 1, 1]} : vector<8x3x3xf32> to vector<8x3x1xf32>
    %76 = vector.shape_cast %75 : vector<8x3x1xf32> to vector<8x3xf32>
    %77 = vector.broadcast %63 : vector<8x1xf32> to vector<8x3xf32>
    %78 = arith.addf %76, %77 : vector<8x3xf32>
    %79 = vector.broadcast %65 : f32 to vector<8x3xf32>
    %80 = arith.addf %78, %79 : vector<8x3xf32>
    %81 = arith.negf %80 : vector<8x3xf32>
    %82 = math.exp %81 : vector<8x3xf32>
    %cst_28 = arith.constant 1.000000e+00 : f32
    %83 = vector.broadcast %cst_28 : f32 to vector<8x3xf32>
    %84 = arith.addf %83, %82 : vector<8x3xf32>
    %85 = arith.divf %83, %84 : vector<8x3xf32>
    %cst_29 = arith.constant dense<0.000000e+00> : vector<8xf32>
    %86 = vector.multi_reduction <add>, %85, %cst_29 [1] : vector<8x3xf32> to vector<8xf32>
    %87 = vector.shape_cast %86 : vector<8xf32> to vector<8x1xf32>
    %cst_30 = arith.constant 9.99999996E-13 : f32
    %88 = vector.broadcast %cst_30 : f32 to vector<8x1xf32>
    %89 = arith.addf %87, %88 : vector<8x1xf32>
    %90 = tpu.reciprocal %89 {approx = true} : vector<8x1xf32> -> vector<8x1xf32>
    %91 = vector.broadcast %90 : vector<8x1xf32> to vector<8x3xf32>
    %92 = arith.mulf %85, %91 : vector<8x3xf32>
    %93 = arith.mulf %74, %92 : vector<8x3xf32>
    %cst_31 = arith.constant dense<0.000000e+00> : vector<8xf32>
    %94 = vector.multi_reduction <add>, %93, %cst_31 [1] : vector<8x3xf32> to vector<8xf32>
    %95 = vector.shape_cast %94 : vector<8xf32> to vector<8x1xf32>
    %c0_32 = arith.constant 0 : index
    %c0_33 = arith.constant 0 : index
    %96 = vector.load %arg8[%c0_32, %c0_33] : memref<8x1xf32, #tpu.memory_space<vmem>>, vector<8x1xf32>
    tpu.vector_store %arg8[%c0_32, %c0_33], %95 {strides = array<i32>} : memref<8x1xf32, #tpu.memory_space<vmem>>, vector<8x1xf32>,
    return
  }
  func.func @transform_0(%arg0: i32) -> (i32, i32) {
    %c0_i32 = arith.constant 0 : i32
    %c0_i32_0 = arith.constant 0 : i32
    return %arg0, %c0_i32 : i32, i32
  }
  func.func @transform_1(%arg0: i32) -> (i32, i32) {
    %c0_i32 = arith.constant 0 : i32
    %c0_i32_0 = arith.constant 0 : i32
    %c0_i32_1 = arith.constant 0 : i32
    return %c0_i32, %c0_i32_0 : i32, i32
  }
  func.func @transform_2(%arg0: i32) -> (i32, i32) {
    %c0_i32 = arith.constant 0 : i32
    %c0_i32_0 = arith.constant 0 : i32
    %c0_i32_1 = arith.constant 0 : i32
    return %c0_i32, %c0_i32_0 : i32, i32
  }
  func.func @transform_3(%arg0: i32) -> (i32, i32) {
    %c0_i32 = arith.constant 0 : i32
    %c0_i32_0 = arith.constant 0 : i32
    %c0_i32_1 = arith.constant 0 : i32
    return %c0_i32, %c0_i32_0 : i32, i32
  }
  func.func @transform_4(%arg0: i32) -> (i32, i32) {
    %c0_i32 = arith.constant 0 : i32
    %c0_i32_0 = arith.constant 0 : i32
    %c0_i32_1 = arith.constant 0 : i32
    return %c0_i32, %c0_i32_0 : i32, i32
  }
  func.func @transform_5(%arg0: i32) -> (i32, i32) {
    %c0_i32 = arith.constant 0 : i32
    %c0_i32_0 = arith.constant 0 : i32
    %c0_i32_1 = arith.constant 0 : i32
    return %c0_i32, %c0_i32_0 : i32, i32
  }
  func.func @transform_6(%arg0: i32) -> (i32, i32) {
    %c0_i32 = arith.constant 0 : i32
    %c0_i32_0 = arith.constant 0 : i32
    %c0_i32_1 = arith.constant 0 : i32
    return %c0_i32, %c0_i32_0 : i32, i32
  }
  func.func @transform_7(%arg0: i32) -> (i32, i32) {
    %c0_i32 = arith.constant 0 : i32
    %c0_i32_0 = arith.constant 0 : i32
    return %arg0, %c0_i32 : i32, i32
  }
  func.func @transform_8(%arg0: i32) -> (i32, i32) {
    %c0_i32 = arith.constant 0 : i32
    %c0_i32_0 = arith.constant 0 : i32
    return %arg0, %c0_i32 : i32, i32
  }
}

</mosaic_0001>

<bundles_post_ra>
// kernel: tpu_custom_call.1
= control target key start
LH: loop header
LB: loop body
LE: loop exit
PB: predicated region body
PF: predicated region fallthrough
CT: control target
= control target key end

     0   :  { %14 = vsyncpa [#allocation3], 0  ;;  %s3807_s0 = inlined_call_operand.vmem [shape: s32[16,8], index: 0, kind: input, shape index: {}]   ;;  %s3808_s1 = inlined_call_operand.vmem [shape: bf16[128,256], index: 1, kind: input, shape index: {}]   ;;  %s3809_s2 = inlined_call_operand.vmem [shape: bf16[128,3], index: 2, kind: input, shape index: {}]   ;;  %s3810_s3 = inlined_call_operand.hbm [shape: bf16[128,128], index: 3, kind: input, shape index: {}]   ;;  %s3811_s4 = inlined_call_operand.vmem [shape: f32[1,128], index: 4, kind: input, shape index: {}]   ;;  %s3812_s5 = inlined_call_operand.vmem [shape: bf16[128,3], index: 5, kind: input, shape index: {}]   ;;  %s3813_s6 = inlined_call_operand.vmem [shape: f32[1,2], index: 6, kind: input, shape index: {}]   ;;  %s3814_s7 = inlined_call_operand.vmem [shape: f32[16,1], index: 7, kind: output, shape index: {0}]   ;;  %s3815_s8 = inlined_call_operand.vmem [shape: s8[48,8], index: 8, kind: output, shape index: {1}]  }
   0x1   :  { %15 = vsyncpa [#allocation4], 0  ;;  %s3131_s27 = smov 0  }
   0x2 LB: > { %s247_s30 = sshll.u32 %s3810_s3, 4  ;;  %s3140_s9 = sadd.s32 4294967295, %s3075_s27   ;;  %s3075_s27 = sphi %s3131_s27, %s21_s27   ;;  %s248_s30 = int_to_ptr.hbm [resolvable:$true] %s247_s30 }
   0x3   : > { %p2555_p0 = scmp.ge.s32.totalorder %s3075_s27, 1  ;;  %p230_p1 = scmp.lt.s32.totalorder %s3075_s27, 3 }
   0x4   : > { %p2840_p2 = scmp.eq.s32.totalorder %s3140_s9, 0  ;;  %s3077_s11 = smov [#allocation2]  }
   0x5   : > { %p3145_p3 = pnand %p2555_p0, %p230_p1  ;;  %s249_s12 = sshll.u32 %s3077_s11, 4  ;;  %s250_s12 = int_to_ptr.vmem [resolvable:$true] %s249_s12 }
   0x6   : > { %s268_s15 = sshll.u32 %s3813_s6, 4  ;;  %s3078_s16 = smov 64   ;;  %s269_s15 = int_to_ptr.vmem [resolvable:$true] %s268_s15 }
   0x7   : > { %p2833_p4 = pneg %p3145_p3  ;;  %s3079_s17 = smov 4  }
   0x8   : > { %s3080_s18 = smov [#allocation5]   ;;  %288 = sbr.rel (%p3145_p3) target bundleno = 1584 (0x630), region = 48 }
   0x9   : > { %p2834_p5 = pnand %p2840_p2, %p2833_p4 }
   0xb   : > { %2836 = dma.hbm_to_vmem [thread:$0]  (!%p2834_p5), %s248_s30, 1024, %s250_s12, [#allocation3], %s3078_s16, %s3078_s16, %s3079_s17  }
   0xc   : > { %2839 = dma.vmem_to_smem (!%p2834_p5), %s269_s15, 16, %s3080_s18, [#allocation4]  }
   0xd   : > { %3066 = dma.done.wait (%p2840_p2), [#allocation3], 1024  }
   0xe   : > { %3068 = vsyncadd (%p2840_p2), [#allocation3], 4294966272 }
   0xf   : > { %3070 = dma.done.wait (%p2840_p2), [#allocation4], 16  }
  0x10   : > { %3072 = vsyncadd (%p2840_p2), [#allocation4], 4294967280 }
  0x11   : > { %300 = sfence }
  0x12   : > { %v353_v0 = vlaneseq  ;;  %p332_p6 = scmp.lt.s32.totalorder %s3140_s9, 1  ;;  %v2632_v6 = vld [vmem:[%s3808_s1 + $0x70] sm:$0xf]  ;;  %v2784_v7 = vld [vmem:[%s3808_s1 + $0x74] sm:$0xf0]  ;;  %v3081_v28 = vmov 0.0  }
  0x13   : > { %v2633_v8 = vor.u32 %v2784_v7, %v2632_v6  ;;  %v2624_v9 = vld [vmem:[%s3808_s1 + $0x60] sm:$0xf]  ;;  %v2782_v10 = vld [vmem:[%s3808_s1 + $0x64] sm:$0xf0]  ;;  %v2783_v11 = vld [vmem:[%s3808_s1 + $0x74] sm:$0xf] }
  0x14   : > { %v354_v1 = vshrl.u32 %v353_v0, 7  ;;  %s3169_s19 = scalar_select %p332_p6, %s3140_s9, 1  ;;  %v2634_v12 = vld [vmem:[%s3808_s1 + $0x78] sm:$0xf0]  ;;  %v2781_v16 = vld [vmem:[%s3808_s1 + $0x64] sm:$0xf]  ;;  %v2625_v19 = vor.u32 %v2782_v10, %v2624_v9 }
  0x15   : > { %2809 = vmatpush.bf16.msra.mxu3 %v2633_v8  ;;  %562 = vmatpush.bf16.msra.mxu0 %v2633_v8  ;;  %v2637_v15 = vor.u32 %v2783_v11, %v2634_v12  ;;  %v2626_v17 = vld [vmem:[%s3808_s1 + $0x68] sm:$0xf0]  ;;  %v2616_v20 = vld [vmem:[%s3808_s1 + $0x50] sm:$0xf]  ;;  %v2780_v21 = vld [vmem:[%s3808_s1 + $0x54] sm:$0xf0] }
  0x16   : > { %2862 = vset.pattern.permute.xlu1 %v354_v1  ;;  %2861 = vset.pattern.permute.xlu0 %v354_v1  ;;  %s2562_s20 = sshll.u32 %s3169_s19, 3  ;;  %v2629_v22 = vor.u32 %v2781_v16, %v2626_v17  ;;  %v2617_v23 = vor.u32 %v2780_v21, %v2616_v20  ;;  %v2608_v24 = vld [vmem:[%s3808_s1 + $0x40] sm:$0xf]  ;;  %v2778_v25 = vld [vmem:[%s3808_s1 + $0x44] sm:$0xf0]  ;;  %s340_s12 = smul.u32 3, %s3140_s9 }
  0x17   : > { %s335_s23 = scalar_lea.vmem %s3807_s0, %s2562_s20  ;;  %2863 = vset.pattern.permute.xlu2 %v354_v1  ;;  %591 = vmatpush.bf16.msra.mxu1 %v2637_v15  ;;  %v2609_v31 = vor.u32 %v2778_v25, %v2608_v24  ;;  %v2600_v41 = vld [vmem:[%s3808_s1 + $0x30] sm:$0xf]  ;;  %v2776_v42 = vld [vmem:[%s3808_s1 + $0x34] sm:$0xf0]  ;;  %v2779_v43 = vld [vmem:[%s3808_s1 + $0x54] sm:$0xf] }
  0x18   : > { %v348_v2 = vld [vmem:[%s335_s23] sm:$0xff]  ;;  %v2601_v44 = vor.u32 %v2776_v42, %v2600_v41  ;;  %v2618_v45 = vld [vmem:[%s3808_s1 + $0x58] sm:$0xf0]  ;;  %v2774_v47 = vld [vmem:[%s3808_s1 + $0x24] sm:$0xf0]  ;;  %p341_p7 = scmp.lt.s32.totalorder %s340_s12, 5  ;;  %s339_s23 = scalar_lea.vmem %s3814_s7, %s2562_s20 }
  0x19   : > { %v366_v3 = vperm.slane %v348_v2, 2  ;;  %v352_v4 = vperm.slane %v348_v2, 0  ;;  %v380_v5 = vperm.slane %v348_v2, 4  ;;  %v373_v13 = vperm.slane %v348_v2, 3  ;;  %2810 = vmatpush.bf16.msra.mxu3 %v2625_v19  ;;  %563 = vmatpush.bf16.msra.mxu0 %v2625_v19  ;;  %v2592_v46 = vld [vmem:[%s3808_s1 + $0x20] sm:$0xf] }
  0x1a   : > { %v359_v14 = vperm.slane %v348_v2, 1  ;;  %v387_v18 = vperm.slane %v348_v2, 5  ;;  %vm349_vm0 = vcmp.ne.s32.totalorder %v348_v2, 1  ;;  %v401_v26 = vperm.slane %v348_v2, 7  ;;  %v2777_v49 = vld [vmem:[%s3808_s1 + $0x44] sm:$0xf] }
  0x1b   : > { %592 = vmatpush.bf16.msra.mxu1 %v2629_v22  ;;  %v394_v27 = vperm.slane %v348_v2, 6  ;;  %v3214_v29 = vsel %vm349_vm0, 1.0, %v3081_v28  ;;  %v2621_v48 = vor.u32 %v2779_v43, %v2618_v45  ;;  %v2610_v50 = vld [vmem:[%s3808_s1 + $0x48] sm:$0xf0]  ;;  %v2593_v51 = vor.u32 %v2774_v47, %v2592_v46  ;;  %v2584_v53 = vld [vmem:[%s3808_s1 + $0x10] sm:$0xf] }
  0x1c   : > { %v897_v30 = vperm.slane %v3214_v29, 0  ;;  %v911_v32 = vperm.slane %v3214_v29, 2  ;;  %v925_v33 = vperm.slane %v3214_v29, 4  ;;  %v918_v34 = vperm.slane %v3214_v29, 3  ;;  %v2772_v54 = vld [vmem:[%s3808_s1 + $0x14] sm:$0xf0] }
  0x1d   : > { %2811 = vmatpush.bf16.msra.mxu3 %v2617_v23  ;;  %564 = vmatpush.bf16.msra.mxu0 %v2617_v23  ;;  %v932_v35 = vperm.slane %v3214_v29, 5  ;;  %v904_v37 = vperm.slane %v3214_v29, 1  ;;  %v939_v39 = vperm.slane %v3214_v29, 6  ;;  %v946_v40 = vperm.slane %v3214_v29, 7  ;;  %v2775_v55 = vld [vmem:[%s3808_s1 + $0x34] sm:$0xf] }
  0x1e   : > { %371 = vperm.xlu1 %2862, %v366_v3   ;;  %357 = vperm.xlu0 %2861, %v352_v4   ;;  %v2864_v36 = vpack.i.bf16 %v925_v33, %v911_v32  ;;  %v2613_v52 = vor.u32 %v2777_v49, %v2610_v50  ;;  %v2585_v56 = vor.u32 %v2772_v54, %v2584_v53  ;;  %v2602_v57 = vld [vmem:[%s3808_s1 + $0x38] sm:$0xf0]  ;;  %v2576_v59 = vld [vmem:[%s3808_s1] sm:$0xf]  ;;  %v2770_v60 = vld [vmem:[%s3808_s1 + $0x4] sm:$0xf0] }
  0x1f   : > { %385 = vperm.xlu2 %2863, %v380_v5   ;;  %v2869_v38 = vpack.i.bf16 %v932_v35, %v918_v34  ;;  %593 = vmatpush.bf16.msra.mxu1 %v2621_v48  ;;  %v2605_v58 = vor.u32 %v2775_v55, %v2602_v57  ;;  %v2773_v61 = vld [vmem:[%s3808_s1 + $0x24] sm:$0xf]  ;;  %v2577_v62 = vor.u32 %v2770_v60, %v2576_v59  ;;  %v2594_v63 = vld [vmem:[%s3808_s1 + $0x28] sm:$0xf0]  ;;  %v3273_v2 = vand.u32 127, %v353_v0  ;;  %v2792_v46 = vld [vmem:[%s3809_s2 + $0x38] sm:$0xff] }
  0x20   : > { %v2597_v1 = vor.u32 %v2773_v61, %v2594_v63  ;;  %v2771_v3 = vld [vmem:[%s3808_s1 + $0x14] sm:$0xf]  ;;  %v2586_v4 = vld [vmem:[%s3808_s1 + $0x18] sm:$0xf0]  ;;  %v2769_v0 = vld [vmem:[%s3808_s1 + $0x4] sm:$0xf]  ;;  %716 = vmatpush.bf16.msra.mxu2 %v2792_v46 }
  0x21   : > { %2812 = vmatpush.bf16.msra.mxu3 %v2609_v31  ;;  %565 = vmatpush.bf16.msra.mxu0 %v2609_v31  ;;  %v2589_v5 = vor.u32 %v2771_v3, %v2586_v4  ;;  %v2578_v7 = vld [vmem:[%s3808_s1 + $0x8] sm:$0xf0]  ;;  %v2800_v47 = vld [vmem:[#allocation2 + $0x38] sm:$0xff]  ;;  %v2799_v48 = vld [vmem:[#allocation2 + $0x30] sm:$0xff]  ;;  %s3846_s12 = smov (!%p341_p7, %s340_s12), 5  ;;  %s2750_s16 = sld [smem:[#allocation5 + $0x1]] }
  0x22   : > { %v2581_v8 = vor.u32 %v2769_v0, %v2578_v7  ;;  %v2790_v49 = vld [vmem:[%s3809_s2 + $0x28] sm:$0xff]  ;;  %v2798_v50 = vld [vmem:[#allocation2 + $0x28] sm:$0xff]  ;;  %v2788_v53 = vld [vmem:[%s3809_s2 + $0x18] sm:$0xff]  ;;  %s2564_s9 = sshll.u32 %s3846_s12, 1  ;;  %s3085_s17 = smov 127  }
  0x23   : > { %594 = vmatpush.bf16.msra.mxu1 %v2613_v52  ;;  %v2797_v52 = vld [vmem:[#allocation2 + $0x20] sm:$0xff]  ;;  %v2796_v54 = vld [vmem:[#allocation2 + $0x18] sm:$0xff]  ;;  %v2787_v55 = vld [vmem:[%s3809_s2 + $0x10] sm:$0xff]  ;;  %s344_s15 = scalar_lea.vmem %s3815_s8, %s2564_s9  ;;  %s1921_s18 = sld [smem:[#allocation5]] }
  0x24   : > { %v2786_v57 = vld [vmem:[%s3809_s2 + $0x8] sm:$0xff]  ;;  %v2785_v59 = vld [vmem:[%s3809_s2] sm:$0xff] }
  0x25   : > { %2813 = vmatpush.bf16.msra.mxu3 %v2601_v44  ;;  %566 = vmatpush.bf16.msra.mxu0 %v2601_v44  ;;  %v2793_v60 = vld [vmem:[#allocation2] sm:$0xff] }
  0x26   : > { %378 = vperm.xlu1 %2862, %v373_v13   ;;  %364 = vperm.xlu0 %2861, %v359_v14  }
  0x27   : > { %392 = vperm.xlu2 %2863, %v387_v18   ;;  %595 = vmatpush.bf16.msra.mxu1 %v2605_v58  ;;  %v2794_v58 = vld [vmem:[#allocation2 + $0x8] sm:$0xff] }
  0x29   : > { %2814 = vmatpush.bf16.msra.mxu3 %v2593_v51  ;;  %567 = vmatpush.bf16.msra.mxu0 %v2593_v51  ;;  %v2789_v51 = vld [vmem:[%s3809_s2 + $0x20] sm:$0xff] }
  0x2b   : > { %596 = vmatpush.bf16.msra.mxu1 %v2597_v1 }
  0x2d   : > { %2815 = vmatpush.bf16.msra.mxu3 %v2585_v56  ;;  %568 = vmatpush.bf16.msra.mxu0 %v2585_v56  ;;  %v2795_v56 = vld [vmem:[#allocation2 + $0x10] sm:$0xff] }
  0x2e   : > { %406 = vperm.xlu1 %2862, %v401_v26   ;;  %399 = vperm.xlu0 %2861, %v394_v27  }
  0x2f   : > { %902 = vperm.xlu2 %2863, %v897_v30   ;;  %597 = vmatpush.bf16.msra.mxu1 %v2589_v5 }
  0x31   : > { %2816 = vmatpush.bf16.msra.mxu3 %v2577_v62  ;;  %569 = vmatpush.bf16.msra.mxu0 %v2577_v62 }
  0x33   : > { %598 = vmatpush.bf16.msra.mxu1 %v2581_v8 }
  0x35   : > { %2817 = vmatpush.bf16.msrb.mxu3 %v2800_v47 }
  0x36   : > { %2865 = vperm.xlu1 %2862, %v2864_v36   ;;  %909 = vperm.xlu0 %2861, %v904_v37  }
  0x37   : > { %2870 = vperm.xlu2 %2863, %v2869_v38   ;;  %1496 = vmatpush.bf16.msrb.mxu1 %v2800_v47 }
  0x39   : > { %2818 = vmatpush.bf16.msrb.mxu3 %v2799_v48 }
  0x3b   : > { %1497 = vmatpush.bf16.msrb.mxu1 %v2799_v48 }
  0x3d   : > { %2819 = vmatpush.bf16.msrb.mxu3 %v2798_v50 }
  0x3e   : > { %944 = vperm.xlu1 %2862, %v939_v39   ;;  %951 = vperm.xlu0 %2861, %v946_v40  }
  0x3f   : > { %1498 = vmatpush.bf16.msrb.mxu1 %v2798_v50  ;;  %v2805_v50 = vld [vmem:[%s3812_s5 + $0x20] sm:$0xff] }
  0x41   : > { %2820 = vmatpush.bf16.msrb.mxu3 %v2797_v52 }
  0x43   : > { %1499 = vmatpush.bf16.msrb.mxu1 %v2797_v52  ;;  %v2803_v52 = vld [vmem:[%s3812_s5 + $0x10] sm:$0xff] }
  0x45   : > { %2821 = vmatpush.bf16.msrb.mxu3 %v2796_v54 }
  0x47   : > { %1500 = vmatpush.bf16.msrb.mxu1 %v2796_v54  ;;  %v2801_v54 = vld [vmem:[%s3812_s5] sm:$0xff] }
  0x49   : > { %2822 = vmatpush.bf16.msrb.mxu3 %v2795_v56 }
  0x4b   : > { %1501 = vmatpush.bf16.msrb.mxu1 %v2795_v56  ;;  %v3354_v56 = vld [vmem:[%s3811_s4] ss:$0 sm:$0xff] }
  0x4d   : > { %2823 = vmatpush.bf16.msrb.mxu3 %v2794_v58 }
  0x4f   : > { %1502 = vmatpush.bf16.msrb.mxu1 %v2794_v58 }
  0x51   : > { %2824 = vmatpush.bf16.msrb.mxu3 %v2793_v60 }
  0x53   : > { %1503 = vmatpush.bf16.msrb.mxu1 %v2793_v60 }
  0x79   : > { %v386_v6 = vpop.permute.xlu2 %385 }
  0x7a   : > { %vm414_vm1 = vcmp.eq.s32.totalorder %v386_v6, %v3273_v2 }
  0x7b   : > { %v2570_v9 = vsel %vm414_vm1, 1.0, %v3081_v28 }
  0x7c   : > { %v438_v10 = vpack.c.bf16 %v2570_v9, %v2570_v9 }
  0x7e   : > { %v470_v13 = vunpack.c.l.b16 %v438_v10 }
  0x81   : > { %v393_v11 = vpop.permute.xlu2 %392 }
  0x82   : > { %vm415_vm2 = vcmp.eq.s32.totalorder %v393_v11, %v3273_v2 }
  0x83   : > { %v2571_v12 = vsel %vm415_vm2, 1.0, %v3081_v28 }
  0x84   : > { %v439_v14 = vpack.c.bf16 %v2571_v12, %v2571_v12 }
  0x86   : > { %v471_v15 = vunpack.c.l.b16 %v439_v14 }
  0x88   : > { %v476_v16 = vpack.c.b16 %v471_v15, %v470_v13 }
  0x8a   : > { %580 = vmatmul.bf16.vlgmr.msra.gmra.mxu3 %v476_v16 }
  0x90   : > { %v372_v17 = vpop.permute.xlu1 %371  ;;  %v358_v18 = vpop.permute.xlu0 %357 }
  0x91   : > { %vm410_vm3 = vcmp.eq.s32.totalorder %v358_v18, %v3273_v2  ;;  %vm412_vm5 = vcmp.eq.s32.totalorder %v372_v17, %v3273_v2 }
  0x92   : > { %v2566_v19 = vsel %vm410_vm3, 1.0, %v3081_v28  ;;  %v2568_v36 = vsel %vm412_vm5, 1.0, %v3081_v28 }
  0x93   : > { %v434_v22 = vpack.c.bf16 %v2566_v19, %v2566_v19  ;;  %v436_v40 = vpack.c.bf16 %v2568_v36, %v2568_v36 }
  0x95   : > { %v466_v25 = vunpack.c.l.b16 %v434_v22  ;;  %v468_v43 = vunpack.c.l.b16 %v436_v40 }
  0x98   : > { %v379_v20 = vpop.permute.xlu1 %378  ;;  %v365_v21 = vpop.permute.xlu0 %364 }
  0x99   : > { %vm411_vm4 = vcmp.eq.s32.totalorder %v365_v21, %v3273_v2  ;;  %vm413_vm6 = vcmp.eq.s32.totalorder %v379_v20, %v3273_v2 }
  0x9a   : > { %v2567_v23 = vsel %vm411_vm4, 1.0, %v3081_v28  ;;  %v2569_v37 = vsel %vm413_vm6, 1.0, %v3081_v28 }
  0x9b   : > { %v435_v24 = vpack.c.bf16 %v2567_v23, %v2567_v23  ;;  %v437_v41 = vpack.c.bf16 %v2569_v37, %v2569_v37  ;;  %v2808_v23 = vld [vmem:[%s3812_s5 + $0x38] sm:$0xff] }
  0x9c   : > { %1601 = vmatpush.bf16.msrb.mxu0 %v2808_v23 }
  0x9d   : > { %v467_v26 = vunpack.c.l.b16 %v435_v24  ;;  %v469_v44 = vunpack.c.l.b16 %v437_v41 }
  0x9f   : > { %v474_v27 = vpack.c.b16 %v467_v26, %v466_v25  ;;  %v475_v45 = vpack.c.b16 %v469_v44, %v468_v43  ;;  %v2807_v25 = vld [vmem:[%s3812_s5 + $0x30] sm:$0xff] }
  0xa0   : > { %v407_v30 = vpop.permute.xlu1 %406  ;;  %v400_v31 = vpop.permute.xlu0 %399  ;;  %1602 = vmatpush.bf16.msrb.mxu0 %v2807_v25 }
  0xa1   : > { %vm417_vm7 = vcmp.eq.s32.totalorder %v407_v30, %v3273_v2  ;;  %vm416_vm8 = vcmp.eq.s32.totalorder %v400_v31, %v3273_v2  ;;  %570 = vmatmul.bf16.vlgmr.msra.gmra.mxu0 %v474_v27  ;;  %599 = vmatmul.bf16.vlgmr.msra.gmra.mxu1 %v474_v27  ;;  %v2806_v27 = vld [vmem:[%s3812_s5 + $0x28] sm:$0xff] }
  0xa2   : > { %v2573_v32 = vsel %vm417_vm7, 1.0, %v3081_v28  ;;  %v2572_v33 = vsel %vm416_vm8, 1.0, %v3081_v28  ;;  %v2791_v28 = vld [vmem:[%s3809_s2 + $0x30] sm:$0xff] }
  0xa3   : > { %v441_v34 = vpack.c.bf16 %v2573_v32, %v2573_v32  ;;  %v440_v35 = vpack.c.bf16 %v2572_v33, %v2572_v33  ;;  %717 = vmatpush.bf16.msra.mxu2 %v2791_v28 }
  0xa4   : > { %1603 = vmatpush.bf16.msrb.mxu0 %v2806_v27 }
  0xa5   : > { %v473_v38 = vunpack.c.l.b16 %v441_v34  ;;  %v472_v39 = vunpack.c.l.b16 %v440_v35 }
  0xa7   : > { %v477_v42 = vpack.c.b16 %v473_v38, %v472_v39  ;;  %718 = vmatpush.bf16.msra.mxu2 %v2790_v49 }
  0xa8   : > { %1604 = vmatpush.bf16.msrb.mxu0 %v2805_v50 }
  0xa9   : > { %585 = vmatmul.bf16.gmra.mxu3 %v477_v42 }
  0xab   : > { %719 = vmatpush.bf16.msra.mxu2 %v2789_v51  ;;  %v2804_v51 = vld [vmem:[%s3812_s5 + $0x18] sm:$0xff] }
  0xac   : > { %1605 = vmatpush.bf16.msrb.mxu0 %v2804_v51 }
  0xaf   : > { %720 = vmatpush.bf16.msra.mxu2 %v2788_v53  ;;  %v2802_v53 = vld [vmem:[%s3812_s5 + $0x8] sm:$0xff] }
  0xb0   : > { %1606 = vmatpush.bf16.msrb.mxu0 %v2803_v52 }
  0xb1   : > { %575 = vmatmul.bf16.gmra.mxu0 %v475_v45  ;;  %604 = vmatmul.bf16.gmra.mxu1 %v475_v45 }
  0xb3   : > { %721 = vmatpush.bf16.msra.mxu2 %v2787_v55 }
  0xb4   : > { %1607 = vmatpush.bf16.msrb.mxu0 %v2802_v53 }
  0xb7   : > { %722 = vmatpush.bf16.msra.mxu2 %v2786_v57 }
  0xb8   : > { %1608 = vmatpush.bf16.msrb.mxu0 %v2801_v54 }
  0xbb   : > { %723 = vmatpush.bf16.msra.mxu2 %v2785_v59 }
  0xc1   : > { %609 = vmatmul.bf16.gmra.mxu1 %v476_v16 }
  0xd1   : > { %614 = vmatmul.bf16.gmra.mxu1 %v477_v42 }
 0x10d   : > { %v581_v16 = vpop.f32.mrf.mxu3 }
 0x115   : > { %v583_v26 = vpop.f32.mrf.mxu3 }
 0x11e   : > { %v571_v61 = vpop.f32.mrf.mxu0  ;;  %v600_v62 = vpop.f32.mrf.mxu1 }
 0x11f   : > { %v620_v63 = vpack.c.bf16 %v600_v62, %v571_v61 }
 0x121   : > { %v652_v5 = vunpack.c.l.b16 %v620_v63  ;;  %v1432_v6 = vunpack.c.h.b16 %v620_v63 }
 0x126   : > { %v573_v1 = vpop.f32.mrf.mxu0  ;;  %v602_v3 = vpop.f32.mrf.mxu1 }
 0x127   : > { %v621_v4 = vpack.c.bf16 %v602_v3, %v573_v1 }
 0x129   : > { %v653_v0 = vunpack.c.l.b16 %v621_v4  ;;  %v1433_v7 = vunpack.c.h.b16 %v621_v4 }
 0x12b   : > { %v660_v8 = vpack.c.b16 %v653_v0, %v652_v5  ;;  %v1440_v9 = vpack.c.b16 %v1433_v7, %v1432_v6 }
 0x12c   : > { %v586_v39 = vpop.f32.mrf.mxu3 }
 0x12d   : > { %724 = vmatmul.bf16.vlgmr.msra.gmra.mxu2 %v660_v8  ;;  %1504 = vmatmul.bf16.vlgmr.msrb.gmra.mxu1 %v1440_v9 }
 0x12e   : > { %v576_v10 = vpop.f32.mrf.mxu0  ;;  %v605_v11 = vpop.f32.mrf.mxu1 }
 0x12f   : > { %v622_v12 = vpack.c.bf16 %v605_v11, %v576_v10 }
 0x131   : > { %v654_v17 = vunpack.c.l.b16 %v622_v12  ;;  %v1434_v18 = vunpack.c.h.b16 %v622_v12 }
 0x134   : > { %v588_v42 = vpop.f32.mrf.mxu3 }
 0x136   : > { %v578_v13 = vpop.f32.mrf.mxu0  ;;  %v607_v14 = vpop.f32.mrf.mxu1 }
 0x137   : > { %v623_v15 = vpack.c.bf16 %v607_v14, %v578_v13 }
 0x139   : > { %v655_v19 = vunpack.c.l.b16 %v623_v15  ;;  %v1435_v20 = vunpack.c.h.b16 %v623_v15 }
 0x13b   : > { %v661_v21 = vpack.c.b16 %v655_v19, %v654_v17  ;;  %v1441_v22 = vpack.c.b16 %v1435_v20, %v1434_v18 }
 0x13d   : > { %729 = vmatmul.bf16.gmra.mxu2 %v661_v21  ;;  %1509 = vmatmul.bf16.vlgmr.msrb.gmra.mxu3 %v1441_v22 }
 0x13e   : > { %v610_v24 = vpop.f32.mrf.mxu1 }
 0x13f   : > { %v624_v30 = vpack.c.bf16 %v610_v24, %v581_v16 }
 0x141   : > { %v656_v33 = vunpack.c.l.b16 %v624_v30  ;;  %v1436_v34 = vunpack.c.h.b16 %v624_v30 }
 0x146   : > { %v612_v31 = vpop.f32.mrf.mxu1 }
 0x147   : > { %v625_v32 = vpack.c.bf16 %v612_v31, %v583_v26  ;;  %v903_v31 = vpop.permute.xlu2 %902 }
 0x149   : > { %v657_v35 = vunpack.c.l.b16 %v625_v32  ;;  %v1437_v36 = vunpack.c.h.b16 %v625_v32 }
 0x14b   : > { %v662_v37 = vpack.c.b16 %v657_v35, %v656_v33  ;;  %v1442_v38 = vpack.c.b16 %v1437_v36, %v1436_v34 }
 0x14d   : > { %734 = vmatmul.bf16.gmra.mxu2 %v662_v37  ;;  %1514 = vmatmul.bf16.gmra.mxu3 %v1442_v38 }
 0x14e   : > { %v615_v40 = vpop.f32.mrf.mxu1 }
 0x14f   : > { %v626_v41 = vpack.c.bf16 %v615_v40, %v586_v39 }
 0x151   : > { %v658_v45 = vunpack.c.l.b16 %v626_v41  ;;  %v1438_v46 = vunpack.c.h.b16 %v626_v41 }
 0x156   : > { %v617_v43 = vpop.f32.mrf.mxu1 }
 0x157   : > { %v627_v44 = vpack.c.bf16 %v617_v43, %v588_v42 }
 0x159   : > { %v659_v47 = vunpack.c.l.b16 %v627_v44  ;;  %v1439_v28 = vunpack.c.h.b16 %v627_v44 }
 0x15b   : > { %v663_v48 = vpack.c.b16 %v659_v47, %v658_v45  ;;  %v1443_v49 = vpack.c.b16 %v1439_v28, %v1438_v46 }
 0x15d   : > { %739 = vmatmul.bf16.gmra.mxu2 %v663_v48  ;;  %1519 = vmatmul.bf16.gmra.mxu3 %v1443_v49  ;;  %v910_v49 = vpop.permute.xlu0 %909 }
 0x1aa   : > { %v1505_v55 = vpop.f32.mrf.mxu1 }
 0x1ab   : > { %v1506_v57 = vadd.f32 %v3354_v56, %v1505_v55 }
 0x1b0   : > { %v725_v58 = vpop.f32.mrf.mxu2 }
 0x1b1   : > { %v2670_v59 = vmul.f32 -1.442695, %v725_v58 }
 0x1b2   : > { %v1507_v60 = vpop.f32.mrf.mxu1 }
 0x1b3   : > { %2884 = vpow2.f32 %v2670_v59  ;;  %v1508_v61 = vadd.f32 %v3354_v56, %v1507_v60 }
 0x1b4   : > { %2886 = vtanh.f32 %v1506_v57  ;;  %v3369_v57 = vpop.permute.xlu1 %2865 }
 0x1b5   : > { %2888 = vtanh.f32 %v1508_v61 }
 0x1b8   : > { %v727_v62 = vpop.f32.mrf.mxu2 }
 0x1b9   : > { %v2885_v63 = vpop.eup %2884  ;;  %v2671_v1 = vmul.f32 -1.442695, %v727_v62 }
 0x1ba   : > { %v2887_v3 = vpop.eup %2886  ;;  %v769_v4 = vadd.f32 1.0, %v2885_v63 }
 0x1bb   : > { %v2889_v5 = vpop.eup %2888  ;;  %2890 = vpow2.f32 %v2671_v1 }
 0x1bc   : > { %2892 = vrcp.f32 %v769_v4  ;;  %v1533_v6 = vpack.c.bf16 %v2889_v5, %v2887_v3  ;;  %v788_v15 = vand.u32 2147483648, %v769_v4  ;;  %v786_v17 = vand.u32 2147483647, %v769_v4 }
 0x1bd   : > { %vm782_vm10 = vweird.f32 %v769_v4  ;;  %v2867_v5 = vunpack.i.l.bf16 %v3369_v57 }
 0x1be   : > { %1609 = vmatmul.bf16.vlgmr.msrb.gmra.mxu0 %v1533_v6  ;;  %v789_v26 = vor.u32 1.1754944e-38, %v788_v15  ;;  %vm787_vm12 = vcmp.eq.f32.partialorder %v786_v17, 8.507059e+37 }
 0x1c0   : > { %v730_v0 = vpop.f32.mrf.mxu2  ;;  %v1510_v7 = vpop.f32.mrf.mxu3 }
 0x1c1   : > { %v2891_v8 = vpop.eup %2890  ;;  %v2672_v9 = vmul.f32 -1.442695, %v730_v0  ;;  %v1511_v14 = vadd.f32 %v3354_v56, %v1510_v7 }
 0x1c2   : > { %v2893_v10 = vpop.eup %2892  ;;  %v770_v11 = vadd.f32 1.0, %v2891_v8 }
 0x1c3   : > { %v778_v12 = vmul.f32 %v2893_v10, %v769_v4  ;;  %2894 = vpow2.f32 %v2672_v9  ;;  %vm783_vm9 = vweird.f32 %v2893_v10 }
 0x1c4   : > { %2896 = vrcp.f32 %v770_v11  ;;  %vm784_vm11 = vmor %vm782_vm10, %vm783_vm9  ;;  %v803_v35 = vand.u32 2147483648, %v770_v11  ;;  %v801_v37 = vand.u32 2147483647, %v770_v11  ;;  %vm797_vm14 = vweird.f32 %v770_v11 }
 0x1c5   : > { %v779_v13 = vsub.f32 1.0, %v778_v12  ;;  %2898 = vtanh.f32 %v1511_v14 }
 0x1c6   : > { %v804_v46 = vor.u32 1.1754944e-38, %v803_v35  ;;  %vm802_vm0 = vcmp.eq.f32.partialorder %v801_v37, 8.507059e+37 }
 0x1c7   : > { %v780_v16 = vmul.f32 %v2893_v10, %v779_v13  ;;  %v3380_v13 = vpop.permute.xlu2 %2870 }
 0x1c8   : > { %v732_v18 = vpop.f32.mrf.mxu2  ;;  %v1512_v19 = vpop.f32.mrf.mxu3 }
 0x1c9   : > { %v2895_v20 = vpop.eup %2894  ;;  %v2673_v21 = vmul.f32 -1.442695, %v732_v18  ;;  %v1513_v22 = vadd.f32 %v3354_v56, %v1512_v19  ;;  %v781_v23 = vadd.f32 %v2893_v10, %v780_v16 }
 0x1ca   : > { %v2897_v24 = vpop.eup %2896  ;;  %v3360_v25 = vadd.f32 1.0, %v2895_v20 }
 0x1cb   : > { %v793_v27 = vmul.f32 %v2897_v24, %v770_v11  ;;  %2900 = vpow2.f32 %v2673_v21  ;;  %v785_v30 = vsel %vm784_vm11, %v2893_v10, %v781_v23  ;;  %vm798_vm13 = vweird.f32 %v2897_v24  ;;  %v2899_v38 = vpop.eup %2898 }
 0x1cc   : > { %2902 = vrcp.f32 %v3360_v25  ;;  %v790_v32 = vsel %vm787_vm12, %v789_v26, %v785_v30  ;;  %vm799_vm15 = vmor %vm797_vm14, %vm798_vm13  ;;  %v818_v55 = vand.u32 2147483648, %v3360_v25  ;;  %v816_v59 = vand.u32 2147483647, %v3360_v25 }
 0x1cd   : > { %2904 = vtanh.f32 %v1513_v22  ;;  %v953_v33 = vmul.f32 %v903_v31, %v790_v32  ;;  %v794_v34 = vsub.f32 1.0, %v793_v27  ;;  %vm812_vm2 = vweird.f32 %v3360_v25 }
 0x1ce   : > { %v819_v0 = vor.u32 1.1754944e-38, %v818_v55  ;;  %vm817_vm4 = vcmp.eq.f32.partialorder %v816_v59, 8.507059e+37  ;;  %v2872_v23 = vunpack.i.l.bf16 %v3380_v13 }
 0x1cf   : > { %961 = vxpose.xlu2.b32.start.end [1/1] (short) (narrow) %v953_v33, 8  ;;  %v795_v36 = vmul.f32 %v2897_v24, %v794_v34 }
 0x1d0   : > { %v735_v39 = vpop.f32.mrf.mxu2  ;;  %v1515_v40 = vpop.f32.mrf.mxu3 }
 0x1d1   : > { %v2901_v41 = vpop.eup %2900  ;;  %v2674_v42 = vmul.f32 -1.442695, %v735_v39  ;;  %v796_v43 = vadd.f32 %v2897_v24, %v795_v36  ;;  %v1516_v54 = vadd.f32 %v3354_v56, %v1515_v40 }
 0x1d2   : > { %v2903_v44 = vpop.eup %2902  ;;  %v3363_v45 = vadd.f32 1.0, %v2901_v41 }
 0x1d3   : > { %v2905_v47 = vpop.eup %2904  ;;  %v808_v28 = vmul.f32 %v2903_v44, %v3360_v25  ;;  %2906 = vpow2.f32 %v2674_v42  ;;  %v800_v48 = vsel %vm799_vm15, %v2897_v24, %v796_v43  ;;  %vm813_vm1 = vweird.f32 %v2903_v44 }
 0x1d4   : > { %2908 = vrcp.f32 %v3363_v45  ;;  %v1534_v50 = vpack.c.bf16 %v2905_v47, %v2899_v38  ;;  %v805_v51 = vsel %vm802_vm0, %v804_v46, %v800_v48  ;;  %vm814_vm3 = vmor %vm812_vm2, %vm813_vm1  ;;  %v833_v12 = vand.u32 2147483648, %v3363_v45 }
 0x1d5   : > { %v954_v52 = vmul.f32 %v910_v49, %v805_v51  ;;  %v809_v53 = vsub.f32 1.0, %v808_v28  ;;  %2910 = vtanh.f32 %v1516_v54  ;;  %v831_v15 = vand.u32 2147483647, %v3363_v45 }
 0x1d6   : > { %1614 = vmatmul.bf16.gmra.mxu0 %v1534_v50  ;;  %vm827_vm6 = vweird.f32 %v3363_v45  ;;  %v834_v25 = vor.u32 1.1754944e-38, %v833_v12  ;;  %v2868_v46 = vunpack.i.h.bf16 %v3369_v57 }
 0x1d7   : > { %993 = vxpose.xlu0.b32.start.end [1/1] (short) (narrow) %v954_v52, 8  ;;  %v810_v58 = vmul.f32 %v2903_v44, %v809_v53  ;;  %vm832_vm8 = vcmp.eq.f32.partialorder %v831_v15, 8.507059e+37  ;;  %v945_v15 = vpop.permute.xlu1 %944 }
 0x1d8   : > { %v737_v60 = vpop.f32.mrf.mxu2  ;;  %v1517_v61 = vpop.f32.mrf.mxu3 }
 0x1d9   : > { %v2907_v62 = vpop.eup %2906  ;;  %v2675_v63 = vmul.f32 -1.442695, %v737_v60  ;;  %v1518_v1 = vadd.f32 %v3354_v56, %v1517_v61  ;;  %v811_v3 = vadd.f32 %v2903_v44, %v810_v58 }
 0x1da   : > { %v2909_v4 = vpop.eup %2908  ;;  %v3375_v6 = vadd.f32 1.0, %v2907_v62 }
 0x1db   : > { %v823_v7 = vmul.f32 %v2909_v4, %v3363_v45  ;;  %2912 = vpow2.f32 %v2675_v63  ;;  %v815_v8 = vsel %vm814_vm3, %v2903_v44, %v811_v3  ;;  %vm828_vm5 = vweird.f32 %v2909_v4  ;;  %v2911_v16 = vpop.eup %2910 }
 0x1dc   : > { %2914 = vrcp.f32 %v3375_v6  ;;  %v820_v9 = vsel %vm817_vm4, %v819_v0, %v815_v8  ;;  %vm829_vm7 = vmor %vm827_vm6, %vm828_vm5  ;;  %v848_v36 = vand.u32 2147483648, %v3375_v6  ;;  %v846_v38 = vand.u32 2147483647, %v3375_v6 }
 0x1dd   : > { %2916 = vtanh.f32 %v1518_v1  ;;  %v955_v10 = vmul.f32 %v2867_v5, %v820_v9  ;;  %v824_v11 = vsub.f32 1.0, %v823_v7  ;;  %vm842_vm10 = vweird.f32 %v3375_v6 }
 0x1de   : > { %v849_v28 = vor.u32 1.1754944e-38, %v848_v36  ;;  %vm847_vm12 = vcmp.eq.f32.partialorder %v846_v38, 8.507059e+37  ;;  %v2873_v63 = vunpack.i.h.bf16 %v3380_v13 }
 0x1df   : > { %1025 = vxpose.xlu1.b32.start.end [1/1] (short) (narrow) %v955_v10, 8  ;;  %v825_v14 = vmul.f32 %v2909_v4, %v824_v11 }
 0x1e0   : > { %v740_v17 = vpop.f32.mrf.mxu2  ;;  %v1520_v18 = vpop.f32.mrf.mxu3 }
 0x1e1   : > { %v2913_v19 = vpop.eup %2912  ;;  %v2676_v20 = vmul.f32 -1.442695, %v740_v17  ;;  %v826_v21 = vadd.f32 %v2909_v4, %v825_v14  ;;  %v1521_v35 = vadd.f32 %v3354_v56, %v1520_v18 }
 0x1e2   : > { %v2915_v22 = vpop.eup %2914  ;;  %v774_v24 = vadd.f32 1.0, %v2913_v19 }
 0x1e3   : > { %v2917_v26 = vpop.eup %2916  ;;  %v838_v27 = vmul.f32 %v2915_v22, %v3375_v6  ;;  %2918 = vpow2.f32 %v2676_v20  ;;  %v830_v30 = vsel %vm829_vm7, %v2909_v4, %v826_v21  ;;  %vm843_vm9 = vweird.f32 %v2915_v22 }
 0x1e4   : > { %2920 = vrcp.f32 %v774_v24  ;;  %v1535_v31 = vpack.c.bf16 %v2917_v26, %v2911_v16  ;;  %v835_v32 = vsel %vm832_vm8, %v834_v25, %v830_v30  ;;  %vm844_vm11 = vmor %vm842_vm10, %vm843_vm9  ;;  %v861_v54 = vand.u32 2147483647, %v774_v24  ;;  %v952_v25 = vpop.permute.xlu0 %951 }
 0x1e5   : > { %v956_v33 = vmul.f32 %v2872_v23, %v835_v32  ;;  %v839_v34 = vsub.f32 1.0, %v838_v27  ;;  %2922 = vtanh.f32 %v1521_v35  ;;  %vm857_vm14 = vweird.f32 %v774_v24 }
 0x1e6   : > { %1619 = vmatmul.bf16.gmra.mxu0 %v1535_v31  ;;  %vm862_vm0 = vcmp.eq.f32.partialorder %v861_v54, 8.507059e+37  ;;  %v3082_v30 = vmov 2   ;;  %vm1630_vm9 = vcmask 64512  }
 0x1e7   : > { %1057 = vxpose.xlu0.b32.start.end [1/1] (short) (narrow) %v956_v33, 8  ;;  %v840_v37 = vmul.f32 %v2915_v22, %v839_v34 }
 0x1e8   : > { %v742_v39 = vpop.f32.mrf.mxu2  ;;  %v1522_v40 = vpop.f32.mrf.mxu3 }
 0x1e9   : > { %v2919_v41 = vpop.eup %2918  ;;  %v2677_v42 = vmul.f32 -1.442695, %v742_v39  ;;  %v1523_v43 = vadd.f32 %v3354_v56, %v1522_v40  ;;  %v841_v44 = vadd.f32 %v2915_v22, %v840_v37  ;;  %v863_v56 = vand.u32 2147483648, %v774_v24 }
 0x1ea   : > { %v2921_v45 = vpop.eup %2920  ;;  %v775_v47 = vadd.f32 1.0, %v2919_v41  ;;  %v3083_v39 = vmov 0  }
 0x1eb   : > { %v853_v48 = vmul.f32 %v2921_v45, %v774_v24  ;;  %2924 = vpow2.f32 %v2677_v42  ;;  %v845_v49 = vsel %vm844_vm11, %v2915_v22, %v841_v44  ;;  %vm858_vm13 = vweird.f32 %v2921_v45  ;;  %v2923_v55 = vpop.eup %2922 }
 0x1ec   : > { %2926 = vrcp.f32 %v775_v47  ;;  %v850_v50 = vsel %vm847_vm12, %v849_v28, %v845_v49  ;;  %vm859_vm15 = vmor %vm857_vm14, %vm858_vm13  ;;  %v864_v61 = vor.u32 1.1754944e-38, %v863_v56  ;;  %v878_v7 = vand.u32 2147483648, %v775_v47 }
 0x1ed   : > { %2928 = vtanh.f32 %v1523_v43  ;;  %v957_v51 = vmul.f32 %v2868_v46, %v850_v50  ;;  %v854_v52 = vsub.f32 1.0, %v853_v48  ;;  %v876_v9 = vand.u32 2147483647, %v775_v47 }
 0x1ee   : > { %vm872_vm2 = vweird.f32 %v775_v47  ;;  %v879_v12 = vor.u32 1.1754944e-38, %v878_v7  ;;  %vm1807_vm13 = vcmask 59392  }
 0x1ef   : > { %1089 = vxpose.xlu2.b32.start.end [1/1] (short) (narrow) %v957_v51, 8  ;;  %v855_v53 = vmul.f32 %v2921_v45, %v854_v52  ;;  %vm877_vm4 = vcmp.eq.f32.partialorder %v876_v9, 8.507059e+37 }
 0x1f1   : > { %v2925_v57 = vpop.eup %2924  ;;  %v856_v58 = vadd.f32 %v2921_v45, %v855_v53 }
 0x1f2   : > { %v2927_v59 = vpop.eup %2926  ;;  %v776_v60 = vadd.f32 1.0, %v2925_v57 }
 0x1f3   : > { %v2929_v62 = vpop.eup %2928  ;;  %v868_v1 = vmul.f32 %v2927_v59, %v775_v47  ;;  %v860_v3 = vsel %vm859_vm15, %v2921_v45, %v856_v58  ;;  %vm873_vm1 = vweird.f32 %v2927_v59 }
 0x1f4   : > { %2930 = vrcp.f32 %v776_v60  ;;  %v1536_v4 = vpack.c.bf16 %v2929_v62, %v2923_v55  ;;  %v865_v5 = vsel %vm862_vm0, %v864_v61, %v860_v3  ;;  %vm874_vm3 = vmor %vm872_vm2, %vm873_vm1  ;;  %v893_v19 = vand.u32 2147483648, %v776_v60 }
 0x1f5   : > { %v958_v6 = vmul.f32 %v2873_v63, %v865_v5  ;;  %v869_v0 = vsub.f32 1.0, %v868_v1  ;;  %v891_v21 = vand.u32 2147483647, %v776_v60  ;;  %vm887_vm6 = vweird.f32 %v776_v60 }
 0x1f6   : > { %1624 = vmatmul.bf16.gmra.mxu0 %v1536_v4  ;;  %v894_v23 = vor.u32 1.1754944e-38, %v893_v19 }
 0x1f7   : > { %1121 = vxpose.xlu2.b32.start.end [1/1] (short) (narrow) %v958_v6, 8  ;;  %v870_v8 = vmul.f32 %v2927_v59, %v869_v0  ;;  %vm892_vm8 = vcmp.eq.f32.partialorder %v891_v21, 8.507059e+37 }
 0x1f9   : > { %v871_v10 = vadd.f32 %v2927_v59, %v870_v8 }
 0x1fa   : > { %v2931_v11 = vpop.eup %2930 }
 0x1fb   : > { %v883_v13 = vmul.f32 %v2931_v11, %v776_v60  ;;  %v875_v14 = vsel %vm874_vm3, %v2927_v59, %v871_v10  ;;  %vm888_vm5 = vweird.f32 %v2931_v11 }
 0x1fc   : > { %v880_v16 = vsel %vm877_vm4, %v879_v12, %v875_v14  ;;  %vm889_vm7 = vmor %vm887_vm6, %vm888_vm5 }
 0x1fd   : > { %v959_v17 = vmul.f32 %v945_v15, %v880_v16  ;;  %v884_v18 = vsub.f32 1.0, %v883_v13 }
 0x1ff   : > { %1153 = vxpose.xlu2.b32.start.end [1/1] (short) (narrow) %v959_v17, 8  ;;  %v885_v20 = vmul.f32 %v2931_v11, %v884_v18 }
 0x201   : > { %v886_v22 = vadd.f32 %v2931_v11, %v885_v20 }
 0x203   : > { %v890_v24 = vsel %vm889_vm7, %v2931_v11, %v886_v22 }
 0x204   : > { %v895_v26 = vsel %vm892_vm8, %v894_v23, %v890_v24 }
 0x205   : > { %v960_v27 = vmul.f32 %v952_v25, %v895_v26 }
 0x207   : > { %1185 = vxpose.xlu0.b32.start.end [1/1] (short) (narrow) %v960_v27, 8 }
 0x232   : > { %2874 = vset.pattern.permute.xlu1 %v3082_v30 }
 0x23b   : > { %v3393_v31 = vpop.f32.mrf.mxu0 }
 0x23c   : > { %1648 = vmatpush.msrb.mxu2 %v3393_v31 }
 0x243   : > { %v1612_v32 = vpop.f32.mrf.mxu0 }
 0x244   : > { %1670 = vmatpush.msra.mxu2 %v1612_v32  ;;  %1872 = vperm.xlu1 %2874, %v1612_v32  }
 0x253   : > { %v1615_v33 = vpop.f32.mrf.mxu0 }
 0x254   : > { %1692 = vmatpush.msra.mxu3 %v1615_v33 }
 0x25b   : > { %v1617_v34 = vpop.f32.mrf.mxu0 }
 0x25c   : > { %1714 = vmatpush.msra.mxu1 %v1617_v34  ;;  %1878 = vperm.xlu1 %2874, %v1617_v34  }
 0x261   : > { %2875 = vset.pattern.permute.xlu2 %v3082_v30 }
 0x263   : > { %v1620_v35 = vpop.f32.mrf.mxu0 }
 0x264   : > { %1881 = vperm.xlu1 %2874, %v1620_v35  }
 0x268   : > { %v3396_v36 = vpop.trf.xlu2  ;;  %1875 = vperm.xlu2 %2875, %v1615_v33  }
 0x269   : > { %v1225_v37 = vrot.slane %v3396_v36, 1  ;;  %v1226_v38 = vrot.slane %v3396_v36, 2  ;;  %vm1257_vm10 = vcmp.gt.f32.partialorder %v3396_v36, 0.5  ;;  %2742 = vmatmul.msk.f32.vlgmr.msrb.gmra.mxu2 %vm1630_vm9, %v3396_v36 }
 0x26a   : > { %v1281_v40 = vsel %vm1257_vm10, 1, %v3083_v39  ;;  %1736 = vmatpush.msrb.mxu2 %v1620_v35 }
 0x26b   : > { %vm1258_vm11 = vcmp.gt.f32.partialorder %v1225_v37, 0.5  ;;  %vm1259_vm12 = vcmp.gt.f32.partialorder %v1226_v38, 0.5  ;;  %1305 = vst [vmem:[#allocation1] ss:$4 sm:$0xff] %v1281_v40  ;;  %v1622_v41 = vpop.f32.mrf.mxu0 }
 0x26c   : > { %v1282_v42 = vsel %vm1258_vm11, 1, %v3083_v39  ;;  %v1283_v43 = vsel %vm1259_vm12, 1, %v3083_v39  ;;  %1758 = vmatpush.msrb.mxu3 %v1622_v41  ;;  %1884 = vperm.xlu1 %2874, %v1622_v41  }
 0x26d   : > { %1307 = vst [vmem:[#allocation1 + $0x1] ss:$4 sm:$0xff] %v1282_v42 }
 0x26e   : > { %1309 = vst [vmem:[#allocation1 + $0x2] ss:$4 sm:$0xff] %v1283_v43  ;;  %2876 = vset.pattern.permute.xlu0 %v3082_v30 }
 0x273   : > { %v1625_v44 = vpop.f32.mrf.mxu0 }
 0x274   : > { %1780 = vmatpush.msrb.mxu1 %v1625_v44  ;;  %1887 = vperm.xlu2 %2875, %v1625_v44  }
 0x27b   : > { %v1009_v45 = vpop.trf.xlu0  ;;  %v3406_v46 = vpop.f32.mrf.mxu0 }
 0x27c   : > { %v1227_v47 = vrot.slane %v1009_v45, 1  ;;  %v1228_v28 = vrot.slane %v1009_v45, 2  ;;  %vm1260_vm14 = vcmp.gt.f32.partialorder %v1009_v45, 0.5  ;;  %2743 = vmatmul.msk.f32.vlgmr.msra.gmra.mxu2 %vm1630_vm9, %v1009_v45  ;;  %v1811_v48 = vsel %vm1807_vm13, %v1009_v45, 0.0 }
 0x27d   : > { %v1284_v49 = vsel %vm1260_vm14, 1, %v3083_v39  ;;  %1802 = vmatpush.msra.mxu2 %v3406_v46  ;;  %1812 = vadd.xlane.f32.xlu0 %v1811_v48 }
 0x27e   : > { %vm1261_vm15 = vcmp.gt.f32.partialorder %v1227_v47, 0.5  ;;  %vm1262_vm0 = vcmp.gt.f32.partialorder %v1228_v28, 0.5  ;;  %1311 = vst [vmem:[#allocation1 + $0x3] ss:$4 sm:$0xff] %v1284_v49 }
 0x27f   : > { %v1285_v50 = vsel %vm1261_vm15, 1, %v3083_v39  ;;  %v1286_v51 = vsel %vm1262_vm0, 1, %v3083_v39 }
 0x280   : > { %1313 = vst [vmem:[#allocation1 + $0x20] ss:$4 sm:$0xff] %v1285_v50  ;;  %v1808_v50 = vsel %vm1807_vm13, %v3396_v36, 0.0 }
 0x281   : > { %1315 = vst [vmem:[#allocation1 + $0x21] ss:$4 sm:$0xff] %v1286_v51  ;;  %v1856_v51 = vsel %vm1630_vm9, %v3214_v29, 0.0 }
 0x283   : > { %v3414_v52 = vpop.trf.xlu1 }
 0x284   : > { %v1229_v56 = vrot.slane %v3414_v52, 1  ;;  %v1230_v53 = vrot.slane %v3414_v52, 2  ;;  %vm1263_vm1 = vcmp.gt.f32.partialorder %v3414_v52, 0.5  ;;  %2744 = vmatmul.msk.f32.vlgmr.msra.gmra.mxu3 %vm1630_vm9, %v3414_v52 }
 0x285   : > { %v1287_v54 = vsel %vm1263_vm1, 1, %v3083_v39  ;;  %v3424_v58 = vld [vmem:[#allocation1] sm:$0xff] }
 0x286   : > { %vm1264_vm2 = vcmp.gt.f32.partialorder %v1229_v56, 0.5  ;;  %vm1265_vm3 = vcmp.gt.f32.partialorder %v1230_v53, 0.5  ;;  %1317 = vst [vmem:[#allocation1 + $0x22] ss:$4 sm:$0xff] %v1287_v54 }
 0x287   : > { %v1288_v55 = vsel %vm1264_vm2, 1, %v3083_v39  ;;  %v1289_v57 = vsel %vm1265_vm3, 1, %v3083_v39  ;;  %vm1342_vm2 = vcmp.ne.s32.totalorder %v3424_v58, 0 }
 0x288   : > { %1319 = vst [vmem:[#allocation1 + $0x23] ss:$4 sm:$0xff] %v1288_v55  ;;  %v3426_v59 = vpop.trf.xlu2  ;;  %v1348_v24 = vsel %vm1342_vm2, 1, %v3083_v39 }
 0x289   : > { %1322 = vst [vmem:[#allocation1] ss:$4 sm:$0xff] %v1289_v57  ;;  %v1233_v60 = vrot.slane %v3426_v59, 1  ;;  %v1234_v61 = vrot.slane %v3426_v59, 2  ;;  %2746 = vmatmul.msk.f32.vlgmr.msrb.gmra.mxu2 %vm1630_vm9, %v3426_v59  ;;  %vm1269_vm4 = vcmp.gt.f32.partialorder %v3426_v59, 0.5 }
 0x28a   : > { %v1293_v1 = vsel %vm1269_vm4, 1, %v3083_v39 }
 0x28b   : > { %vm1270_vm5 = vcmp.gt.f32.partialorder %v1233_v60, 0.5  ;;  %v3433_v62 = vpop.trf.xlu0  ;;  %vm1271_vm6 = vcmp.gt.f32.partialorder %v1234_v61, 0.5  ;;  %v1814_v60 = vsel %vm1807_vm13, %v3414_v52, 0.0 }
 0x28c   : > { %v1231_v63 = vrot.slane %v3433_v62, 1  ;;  %2745 = vmatmul.msk.f32.vlgmr.msra.gmra.mxu1 %vm1630_vm9, %v3433_v62  ;;  %v1232_v3 = vrot.slane %v3433_v62, 2  ;;  %vm1266_vm7 = vcmp.gt.f32.partialorder %v3433_v62, 0.5  ;;  %v1294_v4 = vsel %vm1270_vm5, 1, %v3083_v39 }
 0x28d   : > { %v1290_v5 = vsel %vm1266_vm7, 1, %v3083_v39  ;;  %v1295_v0 = vsel %vm1271_vm6, 1, %v3083_v39  ;;  %v1817_v61 = vsel %vm1807_vm13, %v3433_v62, 0.0 }
 0x28e   : > { %vm1267_vm8 = vcmp.gt.f32.partialorder %v1231_v63, 0.5  ;;  %vm1268_vm10 = vcmp.gt.f32.partialorder %v1232_v3, 0.5  ;;  %1323 = vst [vmem:[#allocation1 + $0x1] ss:$4 sm:$0xff] %v1290_v5 }
 0x28f   : > { %v1321_v6 = vld [vmem:[#allocation1 + $0x20] sm:$0xff]  ;;  %v1291_v8 = vsel %vm1267_vm8, 1, %v3083_v39  ;;  %v1292_v10 = vsel %vm1268_vm10, 1, %v3083_v39 }
 0x290   : > { %1326 = vst [vmem:[#allocation1 + $0x20] ss:$4 sm:$0xff] %v1293_v1  ;;  %v3444_v7 = vpop.trf.xlu2  ;;  %vm1343_vm3 = vcmp.ne.s32.totalorder %v1321_v6, 0  ;;  %v1820_v1 = vsel %vm1807_vm13, %v3426_v59, 0.0 }
 0x291   : > { %1869 = vperm.xlu0 %2876, %v3393_v31   ;;  %1327 = vst [vmem:[#allocation1 + $0x21] ss:$4 sm:$0xff] %v1294_v4  ;;  %vm1272_vm11 = vcmp.gt.f32.partialorder %v3444_v7, 0.5  ;;  %2747 = vmatmul.msk.f32.vlgmr.msrb.gmra.mxu3 %vm1630_vm9, %v3444_v7  ;;  %v1235_v11 = vrot.slane %v3444_v7, 1  ;;  %v1236_v12 = vrot.slane %v3444_v7, 2  ;;  %v1349_v26 = vsel %vm1343_vm3, 1, %v3083_v39 }
 0x292   : > { %1328 = vst [vmem:[#allocation1 + $0x22] ss:$4 sm:$0xff] %v1295_v0  ;;  %v1296_v9 = vsel %vm1272_vm11, 1, %v3083_v39  ;;  %v1354_v31 = vpack.c.b16 %v1348_v24, %v1348_v24  ;;  %v1356_v38 = vpack.c.b16 %v1349_v26, %v1349_v26  ;;  %v1823_v3 = vsel %vm1807_vm13, %v3444_v7, 0.0 }
 0x293   : > { %1329 = vst [vmem:[#allocation1 + $0x23] ss:$4 sm:$0xff] %v1296_v9  ;;  %vm1273_vm12 = vcmp.gt.f32.partialorder %v1235_v11, 0.5  ;;  %vm1274_vm14 = vcmp.gt.f32.partialorder %v1236_v12, 0.5 }
 0x294   : > { %1324 = vst [vmem:[#allocation1 + $0x2] ss:$4 sm:$0xff] %v1291_v8  ;;  %v1297_v16 = vsel %vm1273_vm12, 1, %v3083_v39  ;;  %v1298_v17 = vsel %vm1274_vm14, 1, %v3083_v39  ;;  %v1357_v47 = vpack.c.b8 %v1356_v38, %v1356_v38 }
 0x295   : > { %1325 = vst [vmem:[#allocation1 + $0x3] ss:$4 sm:$0xff] %v1292_v10 }
 0x296   : > { %vm1367_vm14 = vnez %v1357_v47  ;;  %1857 = vadd.xlane.f32.xlu1 %v1856_v51 }
 0x297   : > { %v1373_v56 = vsel %vm1367_vm14, 16843009, %v3083_v39 }
 0x298   : > { %v3455_v13 = vpop.trf.xlu2 }
 0x299   : > { %1890 = vperm.xlu0 %2876, %v3406_v46   ;;  %v1237_v14 = vrot.slane %v3455_v13, 1  ;;  %v1238_v15 = vrot.slane %v3455_v13, 2  ;;  %vm1275_vm15 = vcmp.gt.f32.partialorder %v3455_v13, 0.5  ;;  %2748 = vmatmul.msk.f32.vlgmr.msrb.gmra.mxu1 %vm1630_vm9, %v3455_v13  ;;  %v1355_v46 = vpack.c.b8 %v1354_v31, %v1354_v31 }
 0x29a   : > { %v1299_v19 = vsel %vm1275_vm15, 1, %v3083_v39  ;;  %v1331_v21 = vld [vmem:[#allocation1 + $0x20] sm:$0xff]  ;;  %v1826_v4 = vsel %vm1807_vm13, %v3455_v13, 0.0 }
 0x29b   : > { %vm1276_vm0 = vcmp.gt.f32.partialorder %v1237_v14, 0.5  ;;  %vm1277_vm1 = vcmp.gt.f32.partialorder %v1238_v15, 0.5  ;;  %vm1345_vm5 = vcmp.ne.s32.totalorder %v1331_v21, 0  ;;  %vm1366_vm12 = vnez %v1355_v46 }
 0x29c   : > { %v1330_v18 = vld [vmem:[#allocation1] sm:$0xff]  ;;  %v1300_v20 = vsel %vm1276_vm0, 1, %v3083_v39  ;;  %v1301_v22 = vsel %vm1277_vm1, 1, %v3083_v39  ;;  %v1351_v32 = vsel %vm1345_vm5, 1, %v3083_v39  ;;  %v1372_v49 = vsel %vm1366_vm12, 16843009, %v3083_v39 }
 0x29d   : > { %1332 = vst [vmem:[#allocation1] ss:$4 sm:$0xff] %v1297_v16  ;;  %vm1344_vm4 = vcmp.ne.s32.totalorder %v1330_v18, 0  ;;  %v1360_v42 = vpack.c.b16 %v1351_v32, %v1351_v32  ;;  %1809 = vadd.xlane.f32.xlu2 %v1808_v50  ;;  %vm1902_vm5 = vcmask 1042434  }
 0x29e   : > { %1333 = vst [vmem:[#allocation1 + $0x1] ss:$4 sm:$0xff] %v1298_v17  ;;  %v1350_v27 = vsel %vm1344_vm4, 1, %v3083_v39  ;;  %1818 = vadd.xlane.f32.xlu1 %v1817_v61  ;;  %vm1408_vm4 = vcmask 58368  }
 0x29f   : > { %1334 = vst [vmem:[#allocation1 + $0x2] ss:$4 sm:$0xff] %v1299_v19  ;;  %v1358_v40 = vpack.c.b16 %v1350_v27, %v1350_v27  ;;  %v1361_v48 = vpack.c.b8 %v1360_v42, %v1360_v42 }
 0x2a0   : > { %1335 = vst [vmem:[#allocation1 + $0x3] ss:$4 sm:$0xff] %v1300_v20 }
 0x2a1   : > { %1336 = vst [vmem:[#allocation1 + $0x20] ss:$4 sm:$0xff] %v1301_v22  ;;  %v1359_v28 = vpack.c.b8 %v1358_v40, %v1358_v40  ;;  %vm1369_vm0 = vnez %v1361_v48 }
 0x2a2   : > { %v1375_v55 = vsel %vm1369_vm0, 16843009, %v3083_v39 }
 0x2a3   : > { %vm1368_vm15 = vnez %v1359_v28 }
 0x2a4   : > { %v1374_v53 = vsel %vm1368_vm15, 16843009, %v3083_v39 }
 0x2a5   : > { %1815 = vadd.xlane.f32.xlu2 %v1814_v60 }
 0x2a6   : > { %1827 = vadd.xlane.f32.xlu1 %v1826_v4 }
 0x2a7   : > { %v1340_v23 = vld [vmem:[#allocation1] sm:$0xff] }
 0x2a8   : > { %vm1346_vm6 = vcmp.ne.s32.totalorder %v1340_v23, 0 }
 0x2a9   : > { %v1352_v25 = vsel %vm1346_vm6, 1, %v3083_v39  ;;  %vm1904_vm6 = vcmask 1043459  }
 0x2aa   : > { %v1362_v30 = vpack.c.b16 %v1352_v25, %v1352_v25 }
 0x2ab   : > { %v1201_v33 = vpop.trf.xlu0 }
 0x2ac   : > { %v1363_v34 = vpack.c.b8 %v1362_v30, %v1362_v30  ;;  %v1239_v35 = vrot.slane %v1201_v33, 1  ;;  %v1240_v37 = vrot.slane %v1201_v33, 2  ;;  %vm1278_vm7 = vcmp.gt.f32.partialorder %v1201_v33, 0.5  ;;  %2749 = vmatmul.msk.f32.vlgmr.msra.gmra.mxu2 %vm1630_vm9, %v1201_v33 }
 0x2ad   : > { %v1302_v41 = vsel %vm1278_vm7, 1, %v3083_v39  ;;  %1824 = vadd.xlane.f32.xlu2 %v1823_v3  ;;  %v1829_v62 = vsel %vm1807_vm13, %v1201_v33, 0.0  ;;  %vm1900_vm13 = vcmask 1041409   ;;  %vm3819_vm7 = vcmask 1044484  }
 0x2ae   : > { %vm1370_vm8 = vnez %v1363_v34  ;;  %vm1279_vm10 = vcmp.gt.f32.partialorder %v1239_v35, 0.5  ;;  %vm1280_vm11 = vcmp.gt.f32.partialorder %v1240_v37, 0.5  ;;  %1337 = vst [vmem:[#allocation1 + $0x21] ss:$4 sm:$0xff] %v1302_v41 }
 0x2af   : > { %v1376_v43 = vsel %vm1370_vm8, 16843009, %v3083_v39  ;;  %v1303_v44 = vsel %vm1279_vm10, 1, %v3083_v39  ;;  %v1304_v45 = vsel %vm1280_vm11, 1, %v3083_v39  ;;  %vm3818_vm8 = vcmask 1045509  }
 0x2b0   : > { %1338 = vst [vmem:[#allocation1 + $0x22] ss:$4 sm:$0xff] %v1303_v44  ;;  %vm3817_vm10 = vcmask 1046534   ;;  %vm3816_vm11 = vcmask 1047559  }
 0x2b1   : > { %1339 = vst [vmem:[#allocation1 + $0x23] ss:$4 sm:$0xff] %v1304_v45 }
 0x2b2   : > { %1391 = vst [vmem:[#allocation1 + $0x4] ss:$9 sm:$0xff] %v1376_v43  ;;  %v3084_v43 = vmov 1  }
 0x2b3   : > { %2877 = vset.pattern.permute.xlu1 %v3084_v43  ;;  %2879 = vset.pattern.permute.xlu2 %v3084_v43 }
 0x2b4   : > { %2878 = vset.pattern.permute.xlu0 %v3084_v43 }
 0x2b6   : > { %v1873_v13 = vpop.permute.xlu1 %1872 }
 0x2b7   : > { %v1893_v19 = vperm.slane %v1873_v13, %v3273_v2 }
 0x2b8   : > { %v1341_v54 = vld [vmem:[#allocation1 + $0x20] sm:$0xff] }
 0x2b9   : > { %vm1347_vm1 = vcmp.ne.s32.totalorder %v1341_v54, 0  ;;  %1379 = vst [vmem:[#allocation1] ss:$9 sm:$0xff] %v1372_v49 }
 0x2ba   : > { %v1353_v57 = vsel %vm1347_vm1, 1, %v3083_v39  ;;  %1382 = vst [vmem:[#allocation1 + $0x1] ss:$9 sm:$0xff] %v1373_v56 }
 0x2bb   : > { %v1364_v58 = vpack.c.b16 %v1353_v57, %v1353_v57  ;;  %1385 = vst [vmem:[#allocation1 + $0x2] ss:$9 sm:$0xff] %v1374_v53 }
 0x2bc   : > { %1388 = vst [vmem:[#allocation1 + $0x3] ss:$9 sm:$0xff] %v1375_v55 }
 0x2bd   : > { %v1365_v36 = vpack.c.b8 %v1364_v58, %v1364_v58 }
 0x2bf   : > { %vm1371_vm2 = vnez %v1365_v36 }
 0x2c0   : > { %v1377_v63 = vsel %vm1371_vm2, 16843009, %v3083_v39 }
 0x2c1   : > { %1394 = vst [vmem:[#allocation1 + $0x5] ss:$9 sm:$0xff] %v1377_v63 }
 0x2c2   : > { %v1876_v17 = vpop.permute.xlu2 %1875 }
 0x2c3   : > { %1821 = vadd.xlane.f32.xlu0 %v1820_v1  ;;  %v1894_v21 = vperm.slane %v1876_v17, %v3273_v2 }
 0x2c8   : > { %v1395_v52 = vld [vmem:[#allocation1] sm:$0xff] }
 0x2c9   : > { %vm1397_vm3 = vnez %v1395_v52 }
 0x2ca   : > { %v1398_v5 = vsel %vm1397_vm3, 16843009, %v3083_v39 }
 0x2cb   : > { %v1399_v59 = vunpack.c.0.s8 %v1398_v5  ;;  %v1400_v6 = vunpack.c.1.s8 %v1398_v5  ;;  %v1401_v0 = vunpack.c.2.s8 %v1398_v5  ;;  %1830 = vadd.xlane.f32.xlu0 %v1829_v62 }
 0x2cd   : > { %v1402_v8 = vpack.c.b16 %v1399_v59, %v1399_v59  ;;  %v1404_v9 = vpack.c.b16 %v1400_v6, %v1400_v6  ;;  %v1406_v7 = vpack.c.b16 %v1401_v0, %v1401_v0 }
 0x2ce   : > { %v1879_v14 = vpop.permute.xlu1 %1878  ;;  %v1888_v27 = vpop.permute.xlu2 %1887 }
 0x2cf   : > { %v1403_v10 = vpack.c.b8 %v1402_v8, %v1402_v8  ;;  %v1405_v11 = vpack.c.b8 %v1404_v9, %v1404_v9  ;;  %v1407_v12 = vpack.c.b8 %v1406_v7, %v1406_v7  ;;  %v1895_v23 = vperm.slane %v1879_v14, %v3273_v2 }
 0x2d0   : > { %v1898_v34 = vperm.slane %v1888_v27, %v3273_v2 }
 0x2d1   : > { %1409 = vst.msk [vmem:[%s344_s15] sm:$0x3] %vm1408_vm4, %v1403_v10 }
 0x2d2   : > { %1410 = vst.msk [vmem:[%s344_s15 + $0x2] sm:$0x3] %vm1408_vm4, %v1405_v11 }
 0x2d3   : > { %1411 = vst.msk [vmem:[%s344_s15 + $0x4] sm:$0x3] %vm1408_vm4, %v1407_v12 }
 0x2d6   : > { %v1882_v15 = vpop.permute.xlu1 %1881 }
 0x2d7   : > { %v1896_v25 = vperm.slane %v1882_v15, %v3273_v2 }
 0x2de   : > { %v1885_v22 = vpop.permute.xlu1 %1884 }
 0x2df   : > { %v1897_v30 = vperm.slane %v1885_v22, %v3273_v2 }
 0x2ec   : > { %v1650_v45 = vpop.f32.mrf.mxu2 }
 0x2f0   : > { %v1813_v16 = vpop.xlane.xlu0 %1812 }
 0x2f1   : > { %v1833_v55 = vadd.f32 1e-06, %v1813_v16 }
 0x2ff   : > { %v1672_v48 = vpop.f32.mrf.mxu2 }
 0x303   : > { %v1870_v18 = vpop.permute.xlu0 %1869 }
 0x304   : > { %v1892_v20 = vperm.slane %v1870_v18, %v3273_v2 }
 0x306   : > { %v1901_v24 = vsel %vm1900_vm13, %v1893_v19, %v1892_v20  ;;  %v2109_v20 = vstv %s2750_s16 }
 0x307   : > { %v1903_v26 = vsel %vm1902_vm5, %v1894_v21, %v1901_v24  ;;  %v1694_v1 = vpop.f32.mrf.mxu3 }
 0x308   : > { %v1905_v31 = vsel %vm1904_vm6, %v1895_v23, %v1903_v26 }
 0x309   : > { %v1907_v32 = vsel %vm3819_vm7, %v1896_v25, %v1905_v31  ;;  %v1858_v46 = vpop.xlane.xlu1 %1857  ;;  %v1716_v59 = vpop.f32.mrf.mxu1 }
 0x30a   : > { %v1909_v33 = vsel %vm3818_vm8, %v1897_v30, %v1907_v32  ;;  %v1859_v51 = vadd.f32 1e-06, %v1858_v46 }
 0x30b   : > { %v1891_v35 = vpop.permute.xlu0 %1890  ;;  %v1911_v38 = vsel %vm3817_vm10, %v1898_v34, %v1909_v33 }
 0x30c   : > { %v1899_v37 = vperm.slane %v1891_v35, %v3273_v2  ;;  %v1738_v57 = vpop.f32.mrf.mxu2 }
 0x30e   : > { %v1913_v40 = vsel %vm3816_vm11, %v1899_v37, %v1911_v38 }
 0x30f   : > { %v1915_v41 = vmul.f32 %v3214_v29, %v1913_v40 }
 0x310   : > { %v1810_v44 = vpop.xlane.xlu2 %1809 }
 0x311   : > { %v1916_v42 = vsel %vm1630_vm9, %v1915_v41, 0.0  ;;  %v1832_v49 = vadd.f32 1e-06, %v1810_v44  ;;  %v1819_v50 = vpop.xlane.xlu1 %1818 }
 0x312   : > { %1917 = vadd.xlane.f32.xlu2 %v1916_v42  ;;  %v1835_v53 = vadd.f32 1e-06, %v1819_v50 }
 0x313   : > { %2932 = vrcp.f32 %v1832_v49 }
 0x314   : > { %2934 = vrcp.f32 %v1859_v51  ;;  %v1760_v30 = vpop.f32.mrf.mxu3 }
 0x318   : > { %v1816_v28 = vpop.xlane.xlu2 %1815 }
 0x319   : > { %v1834_v56 = vadd.f32 1e-06, %v1816_v28  ;;  %v2933_v60 = vpop.eup %2932  ;;  %v1828_v61 = vpop.xlane.xlu1 %1827 }
 0x31a   : > { %v2935_v63 = vpop.eup %2934  ;;  %v1838_v62 = vadd.f32 1e-06, %v1828_v61  ;;  %v3524_v7 = vmul.f32 %v2933_v60, %v1650_v45 }
 0x31b   : > { %2936 = vrcp.f32 %v1834_v56 }
 0x31c   : > { %2938 = vrcp.f32 %v1835_v53 }
 0x320   : > { %v1825_v36 = vpop.xlane.xlu2 %1824 }
 0x321   : > { %v1837_v3 = vadd.f32 1e-06, %v1825_v36  ;;  %v2937_v4 = vpop.eup %2936 }
 0x322   : > { %v2939_v52 = vpop.eup %2938  ;;  %v3526_v12 = vmul.f32 %v2937_v4, %v1694_v1 }
 0x323   : > { %v3530_v14 = vmul.f32 %v2939_v52, %v1716_v59 }
 0x32f   : > { %v1804_v10 = vpop.f32.mrf.mxu2 }
 0x336   : > { %v1822_v47 = vpop.xlane.xlu0 %1821 }
 0x337   : > { %v1836_v29 = vadd.f32 1e-06, %v1822_v47  ;;  %v1782_v47 = vpop.f32.mrf.mxu1 }
 0x339   : > { %2940 = vrcp.f32 %v1836_v29 }
 0x33a   : > { %2942 = vrcp.f32 %v1833_v55 }
 0x33e   : > { %v1831_v54 = vpop.xlane.xlu0 %1830 }
 0x33f   : > { %v1839_v58 = vadd.f32 1e-06, %v1831_v54  ;;  %v2941_v5 = vpop.eup %2940 }
 0x340   : > { %v2943_v6 = vpop.eup %2942  ;;  %v3528_v13 = vmul.f32 %v2941_v5, %v1738_v57 }
 0x341   : > { %2944 = vrcp.f32 %v1839_v58  ;;  %v3522_v9 = vmul.f32 %v2943_v6, %v1672_v48 }
 0x342   : > { %2946 = vrcp.f32 %v1837_v3 }
 0x343   : > { %2948 = vrcp.f32 %v1838_v62 }
 0x347   : > { %v2945_v8 = vpop.eup %2944 }
 0x348   : > { %v3532_v19 = vmul.f32 %v2945_v8, %v1804_v10  ;;  %v2947_v27 = vpop.eup %2946 }
 0x349   : > { %v2949_v40 = vpop.eup %2948  ;;  %v3540_v43 = vmul.f32 %v2947_v27, %v1760_v30 }
 0x34a   : > { %v3543_v56 = vmul.f32 %v2949_v40, %v1782_v47 }
 0x385   : > { %v1918_v0 = vpop.xlane.xlu2 %1917 }
 0x386   : > { %v1920_v11 = vmul.f32 %v2935_v63, %v1918_v0 }
 0x388   : > { %v2087_v15 = vperm.slane %v1920_v11, 2  ;;  %v2086_v16 = vperm.slane %v1920_v11, 1  ;;  %v2085_v17 = vperm.slane %v1920_v11, 0  ;;  %v2088_v18 = vperm.slane %v1920_v11, 3 }
 0x389   : > { %v2089_v21 = vperm.slane %v1920_v11, 4  ;;  %v2092_v22 = vperm.slane %v1920_v11, 7  ;;  %v2090_v33 = vperm.slane %v1920_v11, 5  ;;  %v2091_v50 = vperm.slane %v1920_v11, 6 }
 0x38a   : > { %v2103_v23 = vadd.f32 %v2087_v15, %v3526_v12  ;;  %v2102_v24 = vadd.f32 %v2086_v16, %v3522_v9  ;;  %v2101_v25 = vadd.f32 %v2085_v17, %v3524_v7  ;;  %v2104_v26 = vadd.f32 %v2088_v18, %v3530_v14 }
 0x38b   : > { %v2105_v31 = vadd.f32 %v2089_v21, %v3528_v13  ;;  %v2108_v32 = vadd.f32 %v2092_v22, %v3532_v19  ;;  %v2106_v49 = vadd.f32 %v2090_v33, %v3540_v43  ;;  %v2107_v54 = vadd.f32 %v2091_v50, %v3543_v56 }
 0x38c   : > { %v2112_v34 = vadd.f32 %v2109_v20, %v2103_v23  ;;  %v2111_v35 = vadd.f32 %v2109_v20, %v2102_v24  ;;  %v2110_v37 = vadd.f32 %v2109_v20, %v2101_v25  ;;  %v2113_v38 = vadd.f32 %v2109_v20, %v2104_v26 }
 0x38d   : > { %v2114_v41 = vadd.f32 %v2109_v20, %v2105_v31  ;;  %v2117_v42 = vadd.f32 %v2109_v20, %v2108_v32  ;;  %v2115_v53 = vadd.f32 %v2109_v20, %v2106_v49  ;;  %v2116_v61 = vadd.f32 %v2109_v20, %v2107_v54 }
 0x38e   : > { %v2761_v44 = vmul.f32 -1.442695, %v2112_v34  ;;  %v2760_v45 = vmul.f32 -1.442695, %v2111_v35  ;;  %v2759_v46 = vmul.f32 -1.442695, %v2110_v37 }
 0x38f   : > { %v2762_v28 = vmul.f32 -1.442695, %v2113_v38  ;;  %v2763_v48 = vmul.f32 -1.442695, %v2114_v41  ;;  %v2766_v51 = vmul.f32 -1.442695, %v2117_v42 }
 0x390   : > { %2950 = vpow2.f32 %v2761_v44  ;;  %v2764_v60 = vmul.f32 -1.442695, %v2115_v53  ;;  %v2765_v5 = vmul.f32 -1.442695, %v2116_v61 }
 0x391   : > { %2952 = vpow2.f32 %v2760_v45 }
 0x392   : > { %2954 = vpow2.f32 %v2759_v46 }
 0x393   : > { %2956 = vpow2.f32 %v2762_v28 }
 0x394   : > { %2958 = vpow2.f32 %v2763_v48 }
 0x395   : > { %2960 = vpow2.f32 %v2766_v51 }
 0x396   : > { %v2951_v29 = vpop.eup %2950 }
 0x397   : > { %v2953_v55 = vpop.eup %2952  ;;  %v2144_v57 = vadd.f32 1.0, %v2951_v29 }
 0x398   : > { %v2955_v58 = vpop.eup %2954  ;;  %v3546_v36 = vadd.f32 1.0, %v2953_v55 }
 0x399   : > { %v2957_v63 = vpop.eup %2956  ;;  %2962 = vrcp.f32 %v2144_v57  ;;  %v3549_v4 = vadd.f32 1.0, %v2955_v58  ;;  %v2189_v59 = vand.u32 2147483647, %v2144_v57  ;;  %v2191_v6 = vand.u32 2147483648, %v2144_v57 }
 0x39a   : > { %v2959_v1 = vpop.eup %2958  ;;  %2964 = vrcp.f32 %v3546_v36  ;;  %v3551_v52 = vadd.f32 1.0, %v2957_v63  ;;  %v2174_v10 = vand.u32 2147483647, %v3546_v36  ;;  %v2176_v11 = vand.u32 2147483648, %v3546_v36 }
 0x39b   : > { %v2961_v3 = vpop.eup %2960  ;;  %v3553_v62 = vadd.f32 1.0, %v2959_v1  ;;  %2966 = vpow2.f32 %v2764_v60  ;;  %v2159_v17 = vand.u32 2147483647, %v3549_v4  ;;  %vm2185_vm9 = vweird.f32 %v2144_v57 }
 0x39c   : > { %2968 = vrcp.f32 %v3549_v4  ;;  %v3557_v0 = vadd.f32 1.0, %v2961_v3  ;;  %vm2170_vm12 = vweird.f32 %v3546_v36  ;;  %v2161_v20 = vand.u32 2147483648, %v3549_v4 }
 0x39d   : > { %2970 = vrcp.f32 %v3551_v52  ;;  %vm3566_vm14 = vcmp.eq.f32.partialorder %v2189_v59, 8.507059e+37  ;;  %v2192_v24 = vor.u32 1.1754944e-38, %v2191_v6  ;;  %vm3571_vm15 = vcmp.eq.f32.partialorder %v2174_v10, 8.507059e+37 }
 0x39e   : > { %2972 = vrcp.f32 %v3553_v62  ;;  %v2177_v30 = vor.u32 1.1754944e-38, %v2176_v11  ;;  %vm2155_vm0 = vweird.f32 %v3549_v4  ;;  %vm3579_vm2 = vcmp.eq.f32.partialorder %v2159_v17, 8.507059e+37 }
 0x39f   : > { %v2963_v8 = vpop.eup %2962  ;;  %2974 = vpow2.f32 %v2765_v5  ;;  %v2162_v38 = vor.u32 1.1754944e-38, %v2161_v20  ;;  %vm2215_vm4 = vweird.f32 %v3553_v62  ;;  %v2219_v61 = vand.u32 2147483647, %v3553_v62 }
 0x3a0   : > { %v2965_v15 = vpop.eup %2964  ;;  %v2181_v16 = vmul.f32 %v2963_v8, %v2144_v57  ;;  %2976 = vrcp.f32 %v3557_v0  ;;  %vm2186_vm1 = vweird.f32 %v2963_v8  ;;  %v2221_v63 = vand.u32 2147483648, %v3553_v62 }
 0x3a1   : > { %v2166_v18 = vmul.f32 %v2965_v15, %v3546_v36  ;;  %v2967_v21 = vpop.eup %2966  ;;  %vm2171_vm3 = vweird.f32 %v2965_v15  ;;  %vm2187_vm11 = vmor %vm2185_vm9, %vm2186_vm1  ;;  %v2264_v59 = vand.u32 2147483647, %v3557_v0  ;;  %v2266_v6 = vand.u32 2147483648, %v3557_v0 }
 0x3a2   : > { %v2182_v22 = vsub.f32 1.0, %v2181_v16  ;;  %v2969_v25 = vpop.eup %2968  ;;  %v3588_v28 = vadd.f32 1.0, %v2967_v21  ;;  %vm2172_vm8 = vmor %vm2170_vm12, %vm2171_vm3  ;;  %v2206_v16 = vand.u32 2147483648, %v3551_v52  ;;  %vm2200_vm12 = vweird.f32 %v3551_v52 }
 0x3a3   : > { %v2167_v26 = vsub.f32 1.0, %v2166_v18  ;;  %v3576_v31 = vpop.eup %2970  ;;  %v2151_v33 = vmul.f32 %v2969_v25, %v3549_v4  ;;  %vm2156_vm10 = vweird.f32 %v2969_v25  ;;  %v2204_v18 = vand.u32 2147483647, %v3551_v52 }
 0x3a4   : > { %v2183_v32 = vmul.f32 %v2963_v8, %v2182_v22  ;;  %v2973_v35 = vpop.eup %2972  ;;  %v2196_v40 = vmul.f32 %v3576_v31, %v3551_v52  ;;  %2978 = vrcp.f32 %v3588_v28  ;;  %vm2201_vm9 = vweird.f32 %v3576_v31 }
 0x3a5   : > { %v2168_v37 = vmul.f32 %v2965_v15, %v2167_v26  ;;  %v2975_v41 = vpop.eup %2974  ;;  %v2152_v44 = vsub.f32 1.0, %v2151_v33  ;;  %v2211_v45 = vmul.f32 %v2973_v35, %v3553_v62  ;;  %vm2216_vm7 = vweird.f32 %v2973_v35 }
 0x3a6   : > { %v2184_v42 = vadd.f32 %v2963_v8, %v2183_v32  ;;  %v2197_v47 = vsub.f32 1.0, %v2196_v40  ;;  %v2977_v48 = vpop.eup %2976  ;;  %v3598_v55 = vadd.f32 1.0, %v2975_v41  ;;  %v2222_v62 = vor.u32 1.1754944e-38, %v2221_v63 }
 0x3a7   : > { %v2169_v46 = vadd.f32 %v2965_v15, %v2168_v37  ;;  %v2153_v50 = vmul.f32 %v2969_v25, %v2152_v44  ;;  %v2212_v51 = vsub.f32 1.0, %v2211_v45  ;;  %v2256_v29 = vmul.f32 %v2977_v48, %v3557_v0 }
 0x3a8   : > { %v2188_v49 = vsel %vm2187_vm11, %v2963_v8, %v2184_v42  ;;  %v2198_v36 = vmul.f32 %v3576_v31, %v2197_v47  ;;  %vm2261_vm11 = vweird.f32 %v2977_v48  ;;  %2980 = vrcp.f32 %v3598_v55 }
 0x3a9   : > { %v3595_v53 = vsel %vm3566_vm14, %v2192_v24, %v2188_v49  ;;  %v2173_v54 = vsel %vm2172_vm8, %v2965_v15, %v2169_v46  ;;  %v2154_v58 = vadd.f32 %v2969_v25, %v2153_v50  ;;  %v2213_v60 = vmul.f32 %v2973_v35, %v2212_v51  ;;  %vm2157_vm8 = vmor %vm2155_vm0, %vm2156_vm10 }
 0x3aa   : > { %2285 = vperm.xlu2 %2879, %v3595_v53   ;;  %v3603_v57 = vsel %vm3571_vm15, %v2177_v30, %v2173_v54  ;;  %v2257_v1 = vsub.f32 1.0, %v2256_v29  ;;  %vm3622_vm10 = vmor %vm2215_vm4, %vm2216_vm7  ;;  %v2199_v11 = vadd.f32 %v3576_v31, %v2198_v36  ;;  %vm2260_vm7 = vweird.f32 %v3557_v0  ;;  %v2979_v21 = vpop.eup %2978 }
 0x3ab   : > { %2282 = vperm.xlu0 %2878, %v3603_v57   ;;  %v2158_v3 = vsel %vm2157_vm8, %v2969_v25, %v2154_v58  ;;  %v2214_v5 = vadd.f32 %v2973_v35, %v2213_v60  ;;  %vm2220_vm14 = vcmp.eq.f32.partialorder %v2219_v61, 8.507059e+37  ;;  %vm2262_vm15 = vmor %vm2260_vm7, %vm2261_vm11  ;;  %v2267_v20 = vor.u32 1.1754944e-38, %v2266_v6 }
 0x3ac   : > { %v3617_v8 = vsel %vm3579_vm2, %v2162_v38, %v2158_v3  ;;  %v2258_v10 = vmul.f32 %v2977_v48, %v2257_v1  ;;  %vm2202_vm0 = vmor %vm2200_vm12, %vm2201_vm9  ;;  %vm2265_vm1 = vcmp.eq.f32.partialorder %v2264_v59, 8.507059e+37  ;;  %v2226_v0 = vmul.f32 %v2979_v21, %v3588_v28 }
 0x3ad   : > { %2279 = vperm.xlu1 %2877, %v3617_v8   ;;  %v2218_v15 = vsel %vm3622_vm10, %v2973_v35, %v2214_v5  ;;  %v2203_v24 = vsel %vm2202_vm0, %v3576_v31, %v2199_v11  ;;  %v2207_v27 = vor.u32 1.1754944e-38, %v2206_v16  ;;  %vm2205_vm2 = vcmp.eq.f32.partialorder %v2204_v18, 8.507059e+37 }
 0x3ae   : > { %v2259_v17 = vadd.f32 %v2977_v48, %v2258_v10  ;;  %v3636_v22 = vsel %vm2220_vm14, %v2222_v62, %v2218_v15  ;;  %v2981_v26 = vpop.eup %2980  ;;  %v2227_v52 = vsub.f32 1.0, %v2226_v0  ;;  %vm2231_vm3 = vweird.f32 %v2979_v21 }
 0x3af   : > { %v2241_v30 = vmul.f32 %v2981_v26, %v3598_v55  ;;  %v3645_v32 = vsel %vm2205_vm2, %v2207_v27, %v2203_v24  ;;  %vm2230_vm4 = vweird.f32 %v3588_v28  ;;  %v2234_v34 = vand.u32 2147483647, %v3588_v28 }
 0x3b0   : > { %v2263_v23 = vsel %vm2262_vm15, %v2977_v48, %v2259_v17  ;;  %v2228_v33 = vmul.f32 %v2979_v21, %v2227_v52  ;;  %v2236_v35 = vand.u32 2147483648, %v3588_v28  ;;  %v2251_v37 = vand.u32 2147483648, %v3598_v55  ;;  %vm2232_vm10 = vmor %vm2230_vm4, %vm2231_vm3 }
 0x3b1   : > { %v3640_v25 = vsel %vm2265_vm1, %v2267_v20, %v2263_v23  ;;  %v2242_v31 = vsub.f32 1.0, %v2241_v30  ;;  %vm2246_vm8 = vweird.f32 %v2981_v26  ;;  %v2249_v41 = vand.u32 2147483647, %v3598_v55 }
 0x3b2   : > { %2291 = vperm.xlu2 %2879, %v3636_v22   ;;  %v2229_v38 = vadd.f32 %v2979_v21, %v2228_v33  ;;  %vm2245_vm11 = vweird.f32 %v3598_v55  ;;  %v2237_v45 = vor.u32 1.1754944e-38, %v2236_v35  ;;  %v2252_v46 = vor.u32 1.1754944e-38, %v2251_v37 }
 0x3b3   : > { %2300 = vperm.xlu0 %2878, %v3640_v25   ;;  %v2243_v40 = vmul.f32 %v2981_v26, %v2242_v31  ;;  %vm2247_vm9 = vmor %vm2245_vm11, %vm2246_vm8  ;;  %vm2235_vm7 = vcmp.eq.f32.partialorder %v2234_v34, 8.507059e+37  ;;  %vm2250_vm12 = vcmp.eq.f32.partialorder %v2249_v41, 8.507059e+37  ;;  %vm3829_vm14 = vcmask 1044484  }
 0x3b4   : > { %v2233_v42 = vsel %vm2232_vm10, %v2979_v21, %v2229_v38  ;;  %vm3830_vm15 = vcmask 1045509   ;;  %vm2318_vm0 = vcmask 23552   ;;  %vm3831_vm1 = vcmask 1046534  }
 0x3b5   : > { %2288 = vperm.xlu1 %2877, %v3645_v32   ;;  %v2244_v44 = vadd.f32 %v2981_v26, %v2243_v40  ;;  %v2238_v28 = vsel %vm2235_vm7, %v2237_v45, %v2233_v42  ;;  %vm3832_vm2 = vcmask 1047559  }
 0x3b7   : > { %v2248_v47 = vsel %vm2247_vm9, %v2981_v26, %v2244_v44 }
 0x3b8   : > { %v2253_v48 = vsel %vm2250_vm12, %v2252_v46, %v2248_v47 }
 0x3ba   : > { %2297 = vperm.xlu2 %2879, %v2253_v48  }
 0x3bb   : > { %2881 = vset.pattern.permute.xlu0 %v3083_v39 }
 0x3bd   : > { %2294 = vperm.xlu1 %2877, %v2238_v28  }
 0x3c2   : > { %2880 = vset.pattern.permute.xlu2 %v3083_v39 }
 0x3c5   : > { %2882 = vset.pattern.permute.xlu1 %v3083_v39 }
 0x404   : > { %v2286_v49 = vpop.permute.xlu2 %2285 }
 0x405   : > { %v2304_v61 = vperm.slane %v2286_v49, %v3273_v2 }
 0x40c   : > { %v2292_v54 = vpop.permute.xlu2 %2291 }
 0x40d   : > { %v2306_v3 = vperm.slane %v2292_v54, %v3273_v2 }
 0x414   : > { %v2298_v1 = vpop.permute.xlu2 %2297 }
 0x415   : > { %v2308_v4 = vperm.slane %v2298_v1, %v3273_v2 }
 0x41d   : > { %v2283_v51 = vpop.permute.xlu0 %2282 }
 0x41e   : > { %v2303_v55 = vperm.slane %v2283_v51, %v3273_v2 }
 0x41f   : > { %v2280_v50 = vpop.permute.xlu1 %2279 }
 0x420   : > { %v2302_v29 = vperm.slane %v2280_v50, %v3273_v2 }
 0x422   : > { %v2310_v36 = vsel %vm1900_vm13, %v2303_v55, %v2302_v29 }
 0x423   : > { %v2311_v63 = vsel %vm1902_vm5, %v2304_v61, %v2310_v36 }
 0x425   : > { %v2301_v5 = vpop.permute.xlu0 %2300 }
 0x426   : > { %v2309_v11 = vperm.slane %v2301_v5, %v3273_v2 }
 0x427   : > { %v2289_v58 = vpop.permute.xlu1 %2288 }
 0x428   : > { %v2305_v60 = vperm.slane %v2289_v58, %v3273_v2 }
 0x42a   : > { %v2312_v39 = vsel %vm1904_vm6, %v2305_v60, %v2311_v63 }
 0x42b   : > { %v2313_v10 = vsel %vm3829_vm14, %v2306_v3, %v2312_v39 }
 0x42f   : > { %v2295_v59 = vpop.permute.xlu1 %2294 }
 0x430   : > { %v2307_v6 = vperm.slane %v2295_v59, %v3273_v2 }
 0x432   : > { %v2314_v15 = vsel %vm3830_vm15, %v2307_v6, %v2313_v10 }
 0x433   : > { %v2315_v16 = vsel %vm3831_vm1, %v2308_v4, %v2314_v15 }
 0x434   : > { %v2316_v62 = vsel %vm3832_vm2, %v2309_v11, %v2315_v16 }
 0x435   : > { %v2319_v17 = vsel %vm2318_vm0, %v2316_v62, 0.0 }
 0x436   : > { %2320 = vadd.xlane.f32.xlu1 %v2319_v17 }
 0x4a9   : > { %v2321_v18 = vpop.xlane.xlu1 %2320 }
 0x4aa   : > { %v2322_v20 = vadd.f32 1e-12, %v2321_v18 }
 0x4ac   : > { %2982 = vrcp.f32 %v2322_v20 }
 0x4b2   : > { %v2983_v21 = vpop.eup %2982 }
 0x4b3   : > { %v2326_v23 = vperm.slane %v2983_v21, 1  ;;  %v2325_v24 = vperm.slane %v2983_v21, 0  ;;  %v2328_v27 = vperm.slane %v2983_v21, 3  ;;  %v2327_v52 = vperm.slane %v2983_v21, 2 }
 0x4b4   : > { %v2330_v31 = vperm.slane %v2983_v21, 5  ;;  %v2329_v34 = vperm.slane %v2983_v21, 4 }
 0x4b5   : > { %v2342_v0 = vmul.f32 %v2326_v23, %v3603_v57  ;;  %v2341_v26 = vmul.f32 %v2325_v24, %v3617_v8  ;;  %v2344_v30 = vmul.f32 %v2328_v27, %v3645_v32  ;;  %v2343_v33 = vmul.f32 %v2327_v52, %v3595_v53 }
 0x4b6   : > { %v2346_v35 = vmul.f32 %v2330_v31, %v2238_v28  ;;  %v2345_v37 = vmul.f32 %v2329_v34, %v3636_v22  ;;  %v2332_v57 = vperm.slane %v2983_v21, 7  ;;  %v2331_v8 = vperm.slane %v2983_v21, 6 }
 0x4b7   : > { %2359 = vrot.lane.b32.xlu0 %v2342_v0, %s3085_s17  ;;  %2357 = vrot.lane.b32.xlu2 %v2341_v26, %s3085_s17  ;;  %v1923_v32 = vstv %s1921_s18 }
 0x4b8   : > { %v2348_v38 = vmul.f32 %v2332_v57, %v3640_v25  ;;  %v2347_v40 = vmul.f32 %v2331_v8, %v2253_v48  ;;  %v1924_v53 = vadd.f32 %v1923_v32, %v3524_v7  ;;  %v1926_v42 = vadd.f32 %v1923_v32, %v3526_v12 }
 0x4b9   : > { %v1925_v47 = vadd.f32 %v1923_v32, %v3522_v9  ;;  %v1927_v7 = vadd.f32 %v1923_v32, %v3530_v14  ;;  %v1928_v29 = vadd.f32 %v1923_v32, %v3528_v13  ;;  %v1929_v36 = vadd.f32 %v1923_v32, %v3540_v43 }
 0x4ba   : > { %v2751_v41 = vmul.f32 -1.442695, %v1924_v53  ;;  %v2753_v44 = vmul.f32 -1.442695, %v1926_v42  ;;  %v1931_v6 = vadd.f32 %v1923_v32, %v3532_v19  ;;  %v1930_v4 = vadd.f32 %v1923_v32, %v3543_v56 }
 0x4bb   : > { %v2752_v48 = vmul.f32 -1.442695, %v1925_v47  ;;  %v2754_v54 = vmul.f32 -1.442695, %v1927_v7  ;;  %v2755_v61 = vmul.f32 -1.442695, %v1928_v29 }
 0x4bc   : > { %2984 = vpow2.f32 %v2751_v41  ;;  %v2756_v3 = vmul.f32 -1.442695, %v1929_v36  ;;  %v2758_v21 = vmul.f32 -1.442695, %v1931_v6  ;;  %v2757_v24 = vmul.f32 -1.442695, %v1930_v4 }
 0x4bd   : > { %2986 = vpow2.f32 %v2753_v44 }
 0x4bf   : > { %2363 = vrot.lane.b32.xlu0 %v2344_v30, %s3085_s17  ;;  %2361 = vrot.lane.b32.xlu2 %v2343_v33, %s3085_s17 }
 0x4c2   : > { %v2985_v45 = vpop.eup %2984 }
 0x4c3   : > { %v1956_v22 = vadd.f32 1.0, %v2985_v45  ;;  %v2987_v46 = vpop.eup %2986 }
 0x4c4   : > { %v1958_v25 = vadd.f32 1.0, %v2987_v46 }
 0x4c5   : > { %2988 = vrcp.f32 %v1956_v22  ;;  %vm1969_vm3 = vweird.f32 %v1956_v22  ;;  %v1975_v60 = vand.u32 2147483648, %v1956_v22  ;;  %v1973_v1 = vand.u32 2147483647, %v1956_v22 }
 0x4c6   : > { %2990 = vrcp.f32 %v1958_v25  ;;  %vm1999_vm11 = vweird.f32 %v1958_v25  ;;  %v2005_v16 = vand.u32 2147483648, %v1958_v25  ;;  %v2003_v18 = vand.u32 2147483647, %v1958_v25 }
 0x4c7   : > { %2367 = vrot.lane.b32.xlu0 %v2346_v35, %s3085_s17  ;;  %2365 = vrot.lane.b32.xlu2 %v2345_v37, %s3085_s17  ;;  %2992 = vpow2.f32 %v2752_v48  ;;  %v1976_v13 = vor.u32 1.1754944e-38, %v1975_v60  ;;  %vm1974_vm10 = vcmp.eq.f32.partialorder %v1973_v1, 8.507059e+37 }
 0x4c8   : > { %2994 = vpow2.f32 %v2754_v54  ;;  %v2006_v19 = vor.u32 1.1754944e-38, %v2005_v16  ;;  %vm2004_vm12 = vcmp.eq.f32.partialorder %v2003_v18, 8.507059e+37 }
 0x4cb   : > { %v2989_v28 = vpop.eup %2988 }
 0x4cc   : > { %v1965_v49 = vmul.f32 %v2989_v28, %v1956_v22  ;;  %v2991_v51 = vpop.eup %2990  ;;  %vm1970_vm4 = vweird.f32 %v2989_v28 }
 0x4cd   : > { %v2993_v12 = vpop.eup %2992  ;;  %v1995_v58 = vmul.f32 %v2991_v51, %v1958_v25  ;;  %vm3687_vm8 = vmor %vm1969_vm3, %vm1970_vm4  ;;  %vm2000_vm9 = vweird.f32 %v2991_v51 }
 0x4ce   : > { %v1966_v50 = vsub.f32 1.0, %v1965_v49  ;;  %v3685_v9 = vadd.f32 1.0, %v2993_v12  ;;  %v2995_v5 = vpop.eup %2994  ;;  %vm2001_vm7 = vmor %vm1999_vm11, %vm2000_vm9 }
 0x4cf   : > { %2371 = vrot.lane.b32.xlu0 %v2348_v38, %s3085_s17  ;;  %2369 = vrot.lane.b32.xlu2 %v2347_v40, %s3085_s17  ;;  %v1996_v14 = vsub.f32 1.0, %v1995_v58  ;;  %v3696_v10 = vadd.f32 1.0, %v2995_v5 }
 0x4d0   : > { %v1967_v55 = vmul.f32 %v2989_v28, %v1966_v50  ;;  %2996 = vrcp.f32 %v3685_v9  ;;  %v1990_v45 = vand.u32 2147483648, %v3685_v9  ;;  %vm1984_vm15 = vweird.f32 %v3685_v9 }
 0x4d1   : > { %2998 = vpow2.f32 %v2755_v61  ;;  %v1997_v59 = vmul.f32 %v2991_v51, %v1996_v14  ;;  %v1988_v46 = vand.u32 2147483647, %v3685_v9  ;;  %vm2014_vm3 = vweird.f32 %v3696_v10 }
 0x4d2   : > { %v1968_v63 = vadd.f32 %v2989_v28, %v1967_v55  ;;  %3000 = vpow2.f32 %v2756_v3  ;;  %v1991_v48 = vor.u32 1.1754944e-38, %v1990_v45  ;;  %v2018_v55 = vand.u32 2147483647, %v3696_v10 }
 0x4d3   : > { %v1998_v17 = vadd.f32 %v2991_v51, %v1997_v59  ;;  %3002 = vrcp.f32 %v3696_v10  ;;  %vm1989_vm2 = vcmp.eq.f32.partialorder %v1988_v46, 8.507059e+37 }
 0x4d4   : > { %v1972_v43 = vsel %vm3687_vm8, %v2989_v28, %v1968_v63  ;;  %3004 = vpow2.f32 %v2758_v21 }
 0x4d5   : > { %v1977_v11 = vsel %vm1974_vm10, %v1976_v13, %v1972_v43  ;;  %v2002_v0 = vsel %vm2001_vm7, %v2991_v51, %v1998_v17  ;;  %3006 = vpow2.f32 %v2757_v24  ;;  %v2020_v51 = vand.u32 2147483648, %v3696_v10 }
 0x4d6   : > { %v2997_v20 = vpop.eup %2996  ;;  %v2007_v30 = vsel %vm2004_vm12, %v2006_v19, %v2002_v0  ;;  %vm2019_vm10 = vcmp.eq.f32.partialorder %v2018_v55, 8.507059e+37 }
 0x4d7   : > { %v2999_v23 = vpop.eup %2998  ;;  %v1980_v26 = vmul.f32 %v2997_v20, %v3685_v9  ;;  %vm1985_vm14 = vweird.f32 %v2997_v20  ;;  %v2021_v61 = vor.u32 1.1754944e-38, %v2020_v51 }
 0x4d8   : > { %v3001_v56 = vpop.eup %3000  ;;  %v3700_v27 = vadd.f32 1.0, %v2999_v23  ;;  %vm1986_vm1 = vmor %vm1984_vm15, %vm1985_vm14 }
 0x4d9   : > { %v3702_v52 = vadd.f32 1.0, %v3001_v56  ;;  %v1981_v34 = vsub.f32 1.0, %v1980_v26  ;;  %v3003_v35 = vpop.eup %3002 }
 0x4da   : > { %3008 = vrcp.f32 %v3700_v27  ;;  %v3005_v37 = vpop.eup %3004  ;;  %v2010_v38 = vmul.f32 %v3003_v35, %v3696_v10  ;;  %vm2015_vm4 = vweird.f32 %v3003_v35  ;;  %vm2029_vm11 = vweird.f32 %v3700_v27 }
 0x4db   : > { %3010 = vrcp.f32 %v3702_v52  ;;  %v3007_v57 = vpop.eup %3006  ;;  %v1982_v8 = vmul.f32 %v2997_v20, %v1981_v34  ;;  %v3707_v40 = vadd.f32 1.0, %v3005_v37  ;;  %vm3731_vm8 = vmor %vm2014_vm3, %vm2015_vm4  ;;  %v2035_v13 = vand.u32 2147483648, %v3700_v27 }
 0x4dc   : > { %v3711_v53 = vadd.f32 1.0, %v3007_v57  ;;  %v2011_v42 = vsub.f32 1.0, %v2010_v38  ;;  %vm2044_vm7 = vweird.f32 %v3702_v52  ;;  %v2033_v5 = vand.u32 2147483647, %v3700_v27 }
 0x4dd   : > { %v1983_v41 = vadd.f32 %v2997_v20, %v1982_v8  ;;  %3012 = vrcp.f32 %v3707_v40  ;;  %v2050_v6 = vand.u32 2147483648, %v3702_v52  ;;  %v2036_v18 = vor.u32 1.1754944e-38, %v2035_v13 }
 0x4de   : > { %3014 = vrcp.f32 %v3711_v53  ;;  %v2012_v25 = vmul.f32 %v3003_v35, %v2011_v42  ;;  %vm2074_vm3 = vweird.f32 %v3707_v40  ;;  %v2078_v26 = vand.u32 2147483647, %v3707_v40 }
 0x4df   : > { %v1987_v47 = vsel %vm1986_vm1, %v2997_v20, %v1983_v41  ;;  %vm2034_vm1 = vcmp.eq.f32.partialorder %v2033_v5, 8.507059e+37  ;;  %v2051_v23 = vor.u32 1.1754944e-38, %v2050_v6  ;;  %v2063_v37 = vand.u32 2147483647, %v3711_v53 }
 0x4e0   : > { %v3709_v32 = vpop.eup %3008  ;;  %v1992_v7 = vsel %vm1989_vm2, %v1991_v48, %v1987_v47  ;;  %v2013_v29 = vadd.f32 %v3003_v35, %v2012_v25 }
 0x4e1   : > { %v3713_v44 = vpop.eup %3010  ;;  %v2025_v22 = vmul.f32 %v3709_v32, %v3700_v27  ;;  %vm2030_vm9 = vweird.f32 %v3709_v32  ;;  %v2065_v27 = vand.u32 2147483648, %v3711_v53 }
 0x4e2   : > { %v2040_v28 = vmul.f32 %v3713_v44, %v3702_v52  ;;  %v2017_v14 = vsel %vm3731_vm8, %v3003_v35, %v2013_v29  ;;  %vm2045_vm12 = vweird.f32 %v3713_v44  ;;  %vm3751_vm14 = vmor %vm2029_vm11, %vm2030_vm9  ;;  %vm2059_vm8 = vweird.f32 %v3711_v53 }
 0x4e3   : > { %v2026_v49 = vsub.f32 1.0, %v2025_v22  ;;  %v3726_v54 = vpop.eup %3012  ;;  %v2022_v43 = vsel %vm2019_vm10, %v2021_v61, %v2017_v14  ;;  %vm3757_vm15 = vmor %vm2044_vm7, %vm2045_vm12  ;;  %v2066_v8 = vor.u32 1.1754944e-38, %v2065_v27  ;;  %vm2064_vm7 = vcmp.eq.f32.partialorder %v2063_v37, 8.507059e+37 }
 0x4e4   : > { %v2041_v58 = vsub.f32 1.0, %v2040_v28  ;;  %v3729_v36 = vpop.eup %3014  ;;  %v2070_v63 = vmul.f32 %v3726_v54, %v3707_v40  ;;  %vm2075_vm4 = vweird.f32 %v3726_v54  ;;  %vm2079_vm12 = vcmp.eq.f32.partialorder %v2078_v26, 8.507059e+37 }
 0x4e5   : > { %v2027_v60 = vmul.f32 %v3709_v32, %v2026_v49  ;;  %v2055_v1 = vmul.f32 %v3729_v36, %v3711_v53  ;;  %vm2060_vm10 = vweird.f32 %v3729_v36  ;;  %vm2076_vm11 = vmor %vm2074_vm3, %vm2075_vm4 }
 0x4e6   : > { %v2042_v39 = vmul.f32 %v3713_v44, %v2041_v58  ;;  %v2071_v4 = vsub.f32 1.0, %v2070_v63  ;;  %vm2061_vm9 = vmor %vm2059_vm8, %vm2060_vm10 }
 0x4e7   : > { %v2028_v3 = vadd.f32 %v3709_v32, %v2027_v60 }
 0x4e8   : > { %v2043_v16 = vadd.f32 %v3713_v44, %v2042_v39  ;;  %v2072_v24 = vmul.f32 %v3726_v54, %v2071_v4 }
 0x4e9   : > { %v2032_v20 = vsel %vm3751_vm14, %v3709_v32, %v2028_v3  ;;  %vm3841_vm14 = vcmask 1044484  }
 0x4ea   : > { %v2047_v56 = vsel %vm3757_vm15, %v3713_v44, %v2043_v16  ;;  %v2037_v0 = vsel %vm2034_vm1, %v2036_v18, %v2032_v20  ;;  %vm3842_vm15 = vcmask 1045509  }
 0x511   : > { %v2358_v15 = vpop.permute.xlu2 %2357 }
 0x512   : > { %v2381_v62 = vmul.f32 %v2358_v15, %v1977_v11  ;;  %v2056_v11 = vsub.f32 1.0, %v2055_v1 }
 0x514   : > { %2398 = vperm.xlu2 %2880, %v2381_v62   ;;  %v2048_v62 = vand.u32 2147483647, %v3702_v52  ;;  %v2057_v19 = vmul.f32 %v3729_v36, %v2056_v11 }
 0x516   : > { %vm2049_vm2 = vcmp.eq.f32.partialorder %v2048_v62, 8.507059e+37  ;;  %v2058_v35 = vadd.f32 %v3729_v36, %v2057_v19 }
 0x517   : > { %v2052_v52 = vsel %vm2049_vm2, %v2051_v23, %v2047_v56 }
 0x518   : > { %v2062_v32 = vsel %vm2061_vm9, %v3729_v36, %v2058_v35 }
 0x519   : > { %v2362_v33 = vpop.permute.xlu2 %2361  ;;  %v2067_v44 = vsel %vm2064_vm7, %v2066_v8, %v2062_v32 }
 0x51a   : > { %v2383_v31 = vmul.f32 %v2362_v33, %v2007_v30  ;;  %v2073_v33 = vadd.f32 %v3726_v54, %v2072_v24 }
 0x51c   : > { %2404 = vperm.xlu1 %2882, %v2383_v31   ;;  %v2080_v31 = vand.u32 2147483648, %v3707_v40  ;;  %v2077_v41 = vsel %vm2076_vm11, %v3726_v54, %v2073_v33 }
 0x51e   : > { %v2081_v38 = vor.u32 1.1754944e-38, %v2080_v31 }
 0x520   : > { %v2082_v45 = vsel %vm2079_vm12, %v2081_v38, %v2077_v41 }
 0x521   : > { %v2366_v21 = vpop.permute.xlu2 %2365 }
 0x522   : > { %v2385_v34 = vmul.f32 %v2366_v21, %v2037_v0 }
 0x529   : > { %v2360_v50 = vpop.permute.xlu0 %2359  ;;  %v2370_v42 = vpop.permute.xlu2 %2369 }
 0x52a   : > { %v2382_v12 = vmul.f32 %v2360_v50, %v1992_v7  ;;  %v2387_v53 = vmul.f32 %v2370_v42, %v2067_v44 }
 0x52c   : > { %2401 = vperm.xlu0 %2881, %v2382_v12  }
 0x531   : > { %v2364_v59 = vpop.permute.xlu0 %2363 }
 0x532   : > { %v2384_v15 = vmul.f32 %v2364_v59, %v2022_v43 }
 0x534   : > { %2407 = vperm.xlu2 %2880, %v2384_v15  }
 0x539   : > { %v2368_v30 = vpop.permute.xlu0 %2367 }
 0x53a   : > { %v2386_v57 = vmul.f32 %v2368_v30, %v2052_v52 }
 0x53c   : > { %2413 = vperm.xlu0 %2881, %v2386_v57   ;;  %2410 = vperm.xlu2 %2880, %v2385_v34  }
 0x541   : > { %v2372_v22 = vpop.permute.xlu0 %2371 }
 0x542   : > { %v2388_v46 = vmul.f32 %v2372_v22, %v2082_v45 }
 0x544   : > { %2419 = vperm.xlu0 %2881, %v2388_v46   ;;  %2416 = vperm.xlu2 %2880, %v2387_v53  }
 0x56e   : > { %v2399_v40 = vpop.permute.xlu2 %2398 }
 0x56f   : > { %v2421_v48 = vperm.slane %v2399_v40, %v3273_v2 }
 0x58e   : > { %v2408_v47 = vpop.permute.xlu2 %2407  ;;  %v2405_v49 = vpop.permute.xlu1 %2404 }
 0x58f   : > { %v2423_v51 = vperm.slane %v2405_v49, %v3273_v2  ;;  %v2424_v29 = vperm.slane %v2408_v47, %v3273_v2 }
 0x596   : > { %v2411_v7 = vpop.permute.xlu2 %2410 }
 0x597   : > { %v2425_v36 = vperm.slane %v2411_v7, %v3273_v2 }
 0x59e   : > { %v2402_v25 = vpop.permute.xlu0 %2401  ;;  %v2417_v9 = vpop.permute.xlu2 %2416 }
 0x59f   : > { %v2422_v28 = vperm.slane %v2402_v25, %v3273_v2  ;;  %v2427_v63 = vperm.slane %v2417_v9, %v3273_v2 }
 0x5a1   : > { %v2429_v50 = vsel %vm1900_vm13, %v2422_v28, %v2421_v48  ;;  %vm3843_vm13 = vcmask 1046534  }
 0x5a2   : > { %v2430_v54 = vsel %vm1902_vm5, %v2423_v51, %v2429_v50  ;;  %vm3844_vm5 = vcmask 1047559  }
 0x5a3   : > { %v2431_v58 = vsel %vm1904_vm6, %v2424_v29, %v2430_v54  ;;  %vm2440_vm6 = vcmask 7168  }
 0x5a4   : > { %v2432_v60 = vsel %vm3841_vm14, %v2425_v36, %v2431_v58 }
 0x5ae   : > { %v2414_v12 = vpop.permute.xlu0 %2413 }
 0x5af   : > { %v2426_v55 = vperm.slane %v2414_v12, %v3273_v2 }
 0x5b1   : > { %v2433_v61 = vsel %vm3842_vm15, %v2426_v55, %v2432_v60 }
 0x5b2   : > { %v2434_v39 = vsel %vm3843_vm13, %v2427_v63, %v2433_v61 }
 0x5b6   : > { %v2420_v1 = vpop.permute.xlu0 %2419 }
 0x5b7   : > { %v2428_v14 = vperm.slane %v2420_v1, %v3273_v2 }
 0x5b9   : > { %v2435_v3 = vsel %vm3844_vm5, %v2428_v14, %v2434_v39 }
 0x5ba   : > { %v2437_v13 = vsel %vm2318_vm0, %v2435_v3, 0.0 }
 0x5bb   : > { %2438 = vadd.xlane.f32.xlu1 %v2437_v13 }
 0x62e   : > { %v2439_v5 = vpop.xlane.xlu1 %2438 }
 0x62f   : > { %2441 = vst.msk [vmem:[%s339_s23] sm:$0xff] %vm2440_vm6, %v2439_v5 }
 0x630 PF: > { %s21_s27 = sadd.s32 1, %s3075_s27  }
 0x631   : > { %p18_p8 = scmp.ge.s32.totalorder %s21_s27, 4  }
 0x633   :  { %20 = sbr.rel (!%p18_p8) target bundleno = 2 (0x2), region = 112 }
 0x638   :  { %2478 = vsyncpa [#allocation3], 1 }
 0x639   :  { %2480 = vsyncpa [#allocation3 + $0x1], 1 }
 0x63a   :  { %2481 = vsyncpa [#allocation4], 1 }
 0x63b   :  { %2483 = vsyncpa [#allocation4 + $0x1], 1 }

</bundles_post_ra>
